<compile_context>
chip_gen: v7x
topology: tpu7x:2x2x1
jax: 0.10.0
libtpu: 0.0.40
codegen_flags: <defaults>
</compile_context>

<pallas_src>
import functools
import math

import jax
import jax.numpy as jnp
from jax.experimental import pallas as pl
from jax.experimental.pallas import tpu as pltpu

_MXU_DTYPE = jnp.bfloat16  # MXU operand dtype (accumulation stays f32)


# ---------------------------------------------------------------------------
# helpers used inside the kernel
# ---------------------------------------------------------------------------
def _mm(a, b):
    """a @ b on the MXU: bf16 operands, f32 accumulation."""
    return jnp.dot(a.astype(_MXU_DTYPE), b.astype(_MXU_DTYPE),
                   preferred_element_type=jnp.float32)


def _mm_nt(a, b):
    """a @ b.T (contract the last dim of both operands) on the MXU."""
    return jax.lax.dot_general(
        a.astype(_MXU_DTYPE), b.astype(_MXU_DTYPE),
        (((1,), (1,)), ((), ())), preferred_element_type=jnp.float32)


def _layernorm(x, w, b, eps):
    mean = jnp.mean(x, axis=-1, keepdims=True)
    var = jnp.mean(jnp.square(x - mean), axis=-1, keepdims=True)
    return (x - mean) * jax.lax.rsqrt(var + eps) * w + b


def _gelu_exact(x):
    # nn.GELU default: 0.5 * x * (1 + erf(x / sqrt(2)))
    return 0.5 * x * (1.0 + jax.lax.erf(x * (1.0 / math.sqrt(2.0))))


# ---------------------------------------------------------------------------
# fused ViT forward kernel: patch embed + transformer stack + norm + head
# ---------------------------------------------------------------------------
def _vit_fused_kernel(patches_ref, patch_w_ref, patch_b_ref,
                      cls_pos_ref, pos_rest_ref,
                      ln1_w_ref, ln1_b_ref, qkv_w_ref, qkv_b_ref,
                      proj_w_ref, proj_b_ref, ln2_w_ref, ln2_b_ref,
                      fc1_w_ref, fc1_b_ref, fc2_w_ref, fc2_b_ref,
                      norm_w_ref, norm_b_ref, head_w_ref, head_b_ref,
                      o_ref,
                      x_scr,
                      *, N, D, nH, dh, eps, scale):
    d = pl.program_id(1)

    # --- d == 0 prologue: patch embed (Conv2d(k=p, stride=p) == flatten matmul),
    #     bias + pos-embed add, cls token in the last row ------------------------------
    @pl.when(d == 0)
    def _init():
        tok = _mm(patches_ref[0], patch_w_ref[...]) + patch_b_ref[...]   # (N, D)
        x_scr[0:N, :] = tok + pos_rest_ref[...]    # rows [0, N): patch tokens
        x_scr[N:N + 1, :] = cls_pos_ref[...]       # row N: cls token (+ pos[0])

    x = x_scr[...]                                 # (T, D) f32 resident state

    # --- attention branch: LN1 -> qkv -> per-head attention -> proj (+bias) -> residual
    y = _layernorm(x, ln1_w_ref[0], ln1_b_ref[0], eps)
    qkv = _mm(y, qkv_w_ref[0]) + qkv_b_ref[0]      # (T, 3D)
    pw = proj_w_ref[0]                             # (D, D)
    a = jnp.zeros_like(x)
    for h in range(nH):                            # static unroll over heads
        c0 = h * dh
        q = qkv[:, c0:c0 + dh] * scale             # scale on q (T x dh)
        k = qkv[:, D + c0:D + c0 + dh]
        v = qkv[:, 2 * D + c0:2 * D + c0 + dh]
        s = _mm_nt(q, k)                           # (T, T) f32
        s = s - jnp.max(s, axis=-1, keepdims=True)
        p = jnp.exp(s)
        p = p * pl.reciprocal(jnp.sum(p, axis=-1, keepdims=True), approx=True)
        o = _mm(p, v)                              # (T, dh)
        # concat-over-heads + proj  ==  sum_h  o_h @ proj_w[h*dh:(h+1)*dh, :]
        a = a + _mm(o, pw[c0:c0 + dh, :])
    x = x + a + proj_b_ref[0]                      # residual (drop_path = id, eval)

    # --- MLP branch: LN2 -> fc1 + exact GELU -> fc2 -> residual ---------------------
    y = _layernorm(x, ln2_w_ref[0], ln2_b_ref[0], eps)
    y = _gelu_exact(_mm(y, fc1_w_ref[0]) + fc1_b_ref[0])
    y = _mm(y, fc2_w_ref[0]) + fc2_b_ref[0]
    x = x + y
    x_scr[...] = x

    # --- d == last epilogue: final LayerNorm on cls token + classifier head ---------
    @pl.when(d == pl.num_programs(1) - 1)
    def _final():
        c = _layernorm(x[N:N + 1, :], norm_w_ref[...], norm_b_ref[...], eps)
        o_ref[0] = _mm(c, head_w_ref[...]) + head_b_ref[...]


# ---------------------------------------------------------------------------
# ViT forward (timm VisionTransformer semantics, eval mode)
# ---------------------------------------------------------------------------
SMALL_VIT_CFG = dict(
    in_channels=3,
    num_classes=10,
    im_dim=(16, 16),
    resize=False,        # module default resizes to (224,224); small demo skips it
    patch_size=4,
    embed_dim=32,
    depth=2,
    num_heads=2,
    mlp_ratio=4.0,
    ln_eps=1e-6,
)


def init_params(key, cfg):
    p = cfg["patch_size"]
    C = cfg["in_channels"]
    D = cfg["embed_dim"]
    depth = cfg["depth"]
    hidden = int(cfg["mlp_ratio"] * D)
    H, W = (224, 224) if cfg["resize"] else cfg["im_dim"]
    n_patches = (H // p) * (W // p)

    def nrm(k, shape, std=0.02):
        return jax.random.normal(k, shape, jnp.float32) * std

    keys = jax.random.split(key, 4 + 4 * depth)
    params = dict(
        # NOTE: pretrained PyTorch Conv2d weights (D, C, p, p) must be loaded as
        #       weight.reshape(D, C*p*p).T to match the (C, p, p) patch-flatten order.
        patch_w=nrm(keys[0], (C * p * p, D)),
        patch_b=jnp.zeros((D,), jnp.float32),
        cls_token=nrm(keys[1], (1, 1, D)),
        pos_embed=nrm(keys[2], (1, n_patches + 1, D)),
        norm_w=jnp.ones((D,), jnp.float32),
        norm_b=jnp.zeros((D,), jnp.float32),
        head_w=nrm(keys[3], (D, cfg["num_classes"])),
        head_b=jnp.zeros((cfg["num_classes"],), jnp.float32),
        # per-block params stacked on a leading depth axis: the fused kernel fetches
        # block d each grid step (double-buffered by the Pallas pipeline).
        ln1_w=jnp.ones((depth, 1, D), jnp.float32),
        ln1_b=jnp.zeros((depth, 1, D), jnp.float32),
        qkv_w=jnp.stack([nrm(keys[4 + 4 * i + 0], (D, 3 * D)) for i in range(depth)]),
        qkv_b=jnp.zeros((depth, 1, 3 * D), jnp.float32),
        proj_w=jnp.stack([nrm(keys[4 + 4 * i + 1], (D, D)) for i in range(depth)]),
        proj_b=jnp.zeros((depth, 1, D), jnp.float32),
        ln2_w=jnp.ones((depth, 1, D), jnp.float32),
        ln2_b=jnp.zeros((depth, 1, D), jnp.float32),
        fc1_w=jnp.stack([nrm(keys[4 + 4 * i + 2], (D, hidden)) for i in range(depth)]),
        fc1_b=jnp.zeros((depth, 1, hidden), jnp.float32),
        fc2_w=jnp.stack([nrm(keys[4 + 4 * i + 3], (hidden, D)) for i in range(depth)]),
        fc2_b=jnp.zeros((depth, 1, D), jnp.float32),
    )
    return params


def vit_forward(params, x, cfg):
    B, C, H, W = x.shape
    if cfg["resize"]:
        # TODO(synk): transforms.Resize((224,224)) equivalent done in plain JAX.
        x = jax.image.resize(x, (B, C, 224, 224), method="bilinear")
        H = W = 224

    p = cfg["patch_size"]
    D = cfg["embed_dim"]
    nH = cfg["num_heads"]
    depth = cfg["depth"]
    gh, gw = H // p, W // p
    N = gh * gw
    T = N + 1
    Cpp = C * p * p
    dh = D // nH
    scale = dh ** -0.5
    NC = params["head_b"].shape[-1]
    hidden = params["fc1_b"].shape[-1]

    # --- layout prep (pure reshape/transpose in XLA); all compute happens in the kernel
    patches = (x.reshape(B, C, gh, p, gw, p)
                 .transpose(0, 2, 4, 1, 3, 5)             # (B, gh, gw, C, p, p)
                 .reshape(B, N, Cpp))
    cls_pos = params["cls_token"].reshape(1, D) + params["pos_embed"][0, 0:1, :]  # (1, D)
    pos_rest = params["pos_embed"][0, 1:, :]                                      # (N, D)

    kern = functools.partial(_vit_fused_kernel, N=N, D=D, nH=nH, dh=dh,
                             eps=cfg["ln_eps"], scale=scale)

    def wspec(shape):      # stacked per-block weight: fetch block d each step
        return pl.BlockSpec((1,) + shape, lambda b, d: (d, 0, 0))

    def cspec(shape):      # constant (resident) 2-D input
        return pl.BlockSpec(shape, lambda b, d: (0, 0))

    logits3 = pl.pallas_call(
        kern,
        out_shape=jax.ShapeDtypeStruct((B, 1, NC), jnp.float32),
        grid=(B, depth),
        in_specs=[
            pl.BlockSpec((1, N, Cpp), lambda b, d: (b, 0, 0)),  # patches of batch b
            cspec((Cpp, D)), cspec((1, D)),               # patch-embed w, b
            cspec((1, D)),                                # cls + pos[0]
            cspec((N, D)),                                # pos[1:]
            wspec((1, D)), wspec((1, D)),                 # ln1 w, b
            wspec((D, 3 * D)), wspec((1, 3 * D)),         # qkv w, b
            wspec((D, D)), wspec((1, D)),                 # proj w, b
            wspec((1, D)), wspec((1, D)),                 # ln2 w, b
            wspec((D, hidden)), wspec((1, hidden)),       # fc1 w, b
            wspec((hidden, D)), wspec((1, D)),            # fc2 w, b
            cspec((1, D)), cspec((1, D)),                 # final norm w, b
            cspec((D, NC)), cspec((1, NC)),               # head w, b
        ],
        out_specs=pl.BlockSpec((1, 1, NC), lambda b, d: (b, 0, 0)),
        scratch_shapes=[pltpu.VMEM((T, D), jnp.float32)],  # resident token state
        compiler_params=pltpu.CompilerParams(
            dimension_semantics=("parallel", "arbitrary")),
    )(patches, params["patch_w"], params["patch_b"].reshape(1, D),
      cls_pos, pos_rest,
      params["ln1_w"], params["ln1_b"], params["qkv_w"], params["qkv_b"],
      params["proj_w"], params["proj_b"], params["ln2_w"], params["ln2_b"],
      params["fc1_w"], params["fc1_b"], params["fc2_w"], params["fc2_b"],
      params["norm_w"].reshape(1, D), params["norm_b"].reshape(1, D),
      params["head_w"], params["head_b"].reshape(1, NC))

    return logits3.reshape(B, NC)


if __name__ == "__main__":
    cfg = SMALL_VIT_CFG
    key = jax.random.PRNGKey(0)
    kx, kp = jax.random.split(key)
    x = jax.random.normal(kx, (2, cfg["in_channels"], *cfg["im_dim"]), jnp.float32)
    params = init_params(kp, cfg)

    fwd = jax.jit(lambda prm, inp: vit_forward(prm, inp, cfg))
    logits = fwd(params, x)
    jax.block_until_ready(logits)
    assert logits.shape == (2, cfg["num_classes"]), logits.shape
    assert bool(jnp.all(jnp.isfinite(logits)))
    print("KERNEL_OK")
</pallas_src>

<mosaic_0001>
module attributes {stable_mosaic.version = 11 : i64} {
  func.func @_vit_fused_kernel(%arg0: i32, %arg1: i32, %arg2: memref<1x16x48xf32, #tpu.memory_space<vmem>>, %arg3: memref<48x32xf32, #tpu.memory_space<vmem>>, %arg4: memref<1x32xf32, #tpu.memory_space<vmem>>, %arg5: memref<1x32xf32, #tpu.memory_space<vmem>>, %arg6: memref<16x32xf32, #tpu.memory_space<vmem>>, %arg7: memref<1x1x32xf32, #tpu.memory_space<vmem>>, %arg8: memref<1x1x32xf32, #tpu.memory_space<vmem>>, %arg9: memref<1x32x96xf32, #tpu.memory_space<vmem>>, %arg10: memref<1x1x96xf32, #tpu.memory_space<vmem>>, %arg11: memref<1x32x32xf32, #tpu.memory_space<vmem>>, %arg12: memref<1x1x32xf32, #tpu.memory_space<vmem>>, %arg13: memref<1x1x32xf32, #tpu.memory_space<vmem>>, %arg14: memref<1x1x32xf32, #tpu.memory_space<vmem>>, %arg15: memref<1x32x128xf32, #tpu.memory_space<vmem>>, %arg16: memref<1x1x128xf32, #tpu.memory_space<vmem>>, %arg17: memref<1x128x32xf32, #tpu.memory_space<vmem>>, %arg18: memref<1x1x32xf32, #tpu.memory_space<vmem>>, %arg19: memref<1x32xf32, #tpu.memory_space<vmem>>, %arg20: memref<1x32xf32, #tpu.memory_space<vmem>>, %arg21: memref<32x10xf32, #tpu.memory_space<vmem>>, %arg22: memref<1x10xf32, #tpu.memory_space<vmem>>, %arg23: memref<1x1x10xf32, #tpu.memory_space<vmem>>, %arg24: memref<17x32xf32, #tpu.memory_space<vmem>>) attributes {dimension_semantics = [#tpu.dimension_semantics<parallel>, #tpu.dimension_semantics<arbitrary>], iteration_bounds = array<i64: 2, 2>, scalar_prefetch = 0 : i64, scratch_operands = 1 : i64, tpu.core_type = #tpu.core_type<tc>, window_params = [{transform_indices = @transform_0, window_bounds = array<i64: 1, 16, 48>}, {pipeline_mode = #tpu.pipeline_mode<synchronous>, transform_indices = @transform_1, window_bounds = array<i64: 48, 32>}, {pipeline_mode = #tpu.pipeline_mode<synchronous>, transform_indices = @transform_2, window_bounds = array<i64: 1, 32>}, {pipeline_mode = #tpu.pipeline_mode<synchronous>, transform_indices = @transform_3, window_bounds = array<i64: 1, 32>}, {pipeline_mode = #tpu.pipeline_mode<synchronous>, transform_indices = @transform_4, window_bounds = array<i64: 16, 32>}, {transform_indices = @transform_5, window_bounds = array<i64: 1, 1, 32>}, {transform_indices = @transform_6, window_bounds = array<i64: 1, 1, 32>}, {transform_indices = @transform_7, window_bounds = array<i64: 1, 32, 96>}, {transform_indices = @transform_8, window_bounds = array<i64: 1, 1, 96>}, {transform_indices = @transform_9, window_bounds = array<i64: 1, 32, 32>}, {transform_indices = @transform_10, window_bounds = array<i64: 1, 1, 32>}, {transform_indices = @transform_11, window_bounds = array<i64: 1, 1, 32>}, {transform_indices = @transform_12, window_bounds = array<i64: 1, 1, 32>}, {transform_indices = @transform_13, window_bounds = array<i64: 1, 32, 128>}, {transform_indices = @transform_14, window_bounds = array<i64: 1, 1, 128>}, {transform_indices = @transform_15, window_bounds = array<i64: 1, 128, 32>}, {transform_indices = @transform_16, window_bounds = array<i64: 1, 1, 32>}, {pipeline_mode = #tpu.pipeline_mode<synchronous>, transform_indices = @transform_17, window_bounds = array<i64: 1, 32>}, {pipeline_mode = #tpu.pipeline_mode<synchronous>, transform_indices = @transform_18, window_bounds = array<i64: 1, 32>}, {pipeline_mode = #tpu.pipeline_mode<synchronous>, transform_indices = @transform_19, window_bounds = array<i64: 32, 10>}, {pipeline_mode = #tpu.pipeline_mode<synchronous>, transform_indices = @transform_20, window_bounds = array<i64: 1, 10>}, {transform_indices = @transform_21, window_bounds = array<i64: 1, 1, 10>}]} {
    %c0_i32 = arith.constant 0 : i32
    %0 = arith.cmpi eq, %arg1, %c0_i32 : i32
    %1 = arith.extui %0 : i1 to i32
    %c0_i32_0 = arith.constant 0 : i32
    %2 = arith.cmpi ne, %1, %c0_i32_0 : i32
    scf.if %2 {
      %c0_69 = arith.constant 0 : index
      %c0_70 = arith.constant 0 : index
      %c0_71 = arith.constant 0 : index
      %156 = vector.load %arg2[%c0_69, %c0_70, %c0_71] : memref<1x16x48xf32, #tpu.memory_space<vmem>>, vector<1x16x48xf32>
      %157 = vector.shape_cast %156 : vector<1x16x48xf32> to vector<16x48xf32>
      %c0_72 = arith.constant 0 : index
      %c0_73 = arith.constant 0 : index
      %158 = vector.load %arg3[%c0_72, %c0_73] : memref<48x32xf32, #tpu.memory_space<vmem>>, vector<48x32xf32>
      %159 = arith.truncf %157 : vector<16x48xf32> to vector<16x48xbf16>
      %160 = arith.truncf %158 : vector<48x32xf32> to vector<48x32xbf16>
      %cst_74 = arith.constant dense<0.000000e+00> : vector<16x32xf32>
      %161 = tpu.matmul %159, %160, %cst_74 {dimension_numbers = #tpu.dot_dimension_numbers<[1], [0], [0], [1], [0, 0, 1, 1], [], []>} : vector<16x48xbf16>, vector<48x32xbf16>, vector<16x32xf32> -> vector<16x32xf32>
      %c0_75 = arith.constant 0 : index
      %c0_76 = arith.constant 0 : index
      %162 = vector.load %arg4[%c0_75, %c0_76] : memref<1x32xf32, #tpu.memory_space<vmem>>, vector<1x32xf32>
      %163 = vector.broadcast %162 : vector<1x32xf32> to vector<16x32xf32>
      %164 = arith.addf %161, %163 : vector<16x32xf32>
      %c0_77 = arith.constant 0 : index
      %c0_78 = arith.constant 0 : index
      %165 = vector.load %arg6[%c0_77, %c0_78] : memref<16x32xf32, #tpu.memory_space<vmem>>, vector<16x32xf32>
      %166 = arith.addf %164, %165 : vector<16x32xf32>
      %c0_79 = arith.constant 0 : index
      %c0_80 = arith.constant 0 : index
      %167 = vector.load %arg24[%c0_79, %c0_80] : memref<17x32xf32, #tpu.memory_space<vmem>>, vector<16x32xf32>
      tpu.vector_store %arg24[%c0_79, %c0_80], %166 {strides = array<i32>} : memref<17x32xf32, #tpu.memory_space<vmem>>, vector<16x32xf32>,
      %c0_81 = arith.constant 0 : index
      %c0_82 = arith.constant 0 : index
      %168 = vector.load %arg5[%c0_81, %c0_82] : memref<1x32xf32, #tpu.memory_space<vmem>>, vector<1x32xf32>
      %c16 = arith.constant 16 : index
      %c0_83 = arith.constant 0 : index
      %169 = vector.load %arg24[%c16, %c0_83] : memref<17x32xf32, #tpu.memory_space<vmem>>, vector<1x32xf32>
      tpu.vector_store %arg24[%c16, %c0_83], %168 {strides = array<i32>} : memref<17x32xf32, #tpu.memory_space<vmem>>, vector<1x32xf32>,
    } else {
    }
    %c0 = arith.constant 0 : index
    %c0_1 = arith.constant 0 : index
    %3 = vector.load %arg24[%c0, %c0_1] : memref<17x32xf32, #tpu.memory_space<vmem>>, vector<17x32xf32>
    %c0_2 = arith.constant 0 : index
    %c0_3 = arith.constant 0 : index
    %c0_4 = arith.constant 0 : index
    %4 = vector.load %arg7[%c0_2, %c0_3, %c0_4] : memref<1x1x32xf32, #tpu.memory_space<vmem>>, vector<1x1x32xf32>
    %5 = vector.shape_cast %4 : vector<1x1x32xf32> to vector<1x32xf32>
    %c0_5 = arith.constant 0 : index
    %c0_6 = arith.constant 0 : index
    %c0_7 = arith.constant 0 : index
    %6 = vector.load %arg8[%c0_5, %c0_6, %c0_7] : memref<1x1x32xf32, #tpu.memory_space<vmem>>, vector<1x1x32xf32>
    %7 = vector.shape_cast %6 : vector<1x1x32xf32> to vector<1x32xf32>
    %cst = arith.constant dense<0.000000e+00> : vector<17xf32>
    %8 = vector.multi_reduction <add>, %3, %cst [1] : vector<17x32xf32> to vector<17xf32>
    %9 = vector.shape_cast %8 : vector<17xf32> to vector<17x1xf32>
    %cst_8 = arith.constant 3.200000e+01 : f32
    %10 = vector.broadcast %cst_8 : f32 to vector<17x1xf32>
    %11 = arith.divf %9, %10 : vector<17x1xf32>
    %12 = vector.broadcast %11 : vector<17x1xf32> to vector<17x32xf32>
    %13 = arith.subf %3, %12 : vector<17x32xf32>
    %14 = arith.mulf %13, %13 : vector<17x32xf32>
    %cst_9 = arith.constant dense<0.000000e+00> : vector<17xf32>
    %15 = vector.multi_reduction <add>, %14, %cst_9 [1] : vector<17x32xf32> to vector<17xf32>
    %16 = vector.shape_cast %15 : vector<17xf32> to vector<17x1xf32>
    %cst_10 = arith.constant 3.200000e+01 : f32
    %17 = vector.broadcast %cst_10 : f32 to vector<17x1xf32>
    %18 = arith.divf %16, %17 : vector<17x1xf32>
    %19 = vector.broadcast %11 : vector<17x1xf32> to vector<17x32xf32>
    %20 = arith.subf %3, %19 : vector<17x32xf32>
    %cst_11 = arith.constant 9.99999997E-7 : f32
    %21 = vector.broadcast %cst_11 : f32 to vector<17x1xf32>
    %22 = arith.addf %18, %21 : vector<17x1xf32>
    %23 = math.rsqrt %22 : vector<17x1xf32>
    %24 = vector.broadcast %23 : vector<17x1xf32> to vector<17x32xf32>
    %25 = arith.mulf %20, %24 : vector<17x32xf32>
    %26 = vector.broadcast %5 : vector<1x32xf32> to vector<17x32xf32>
    %27 = arith.mulf %25, %26 : vector<17x32xf32>
    %28 = vector.broadcast %7 : vector<1x32xf32> to vector<17x32xf32>
    %29 = arith.addf %27, %28 : vector<17x32xf32>
    %c0_12 = arith.constant 0 : index
    %c0_13 = arith.constant 0 : index
    %c0_14 = arith.constant 0 : index
    %30 = vector.load %arg9[%c0_12, %c0_13, %c0_14] : memref<1x32x96xf32, #tpu.memory_space<vmem>>, vector<1x32x96xf32>
    %31 = vector.shape_cast %30 : vector<1x32x96xf32> to vector<32x96xf32>
    %32 = arith.truncf %29 : vector<17x32xf32> to vector<17x32xbf16>
    %33 = arith.truncf %31 : vector<32x96xf32> to vector<32x96xbf16>
    %cst_15 = arith.constant dense<0.000000e+00> : vector<17x96xf32>
    %34 = tpu.matmul %32, %33, %cst_15 {dimension_numbers = #tpu.dot_dimension_numbers<[1], [0], [0], [1], [0, 0, 1, 1], [], []>} : vector<17x32xbf16>, vector<32x96xbf16>, vector<17x96xf32> -> vector<17x96xf32>
    %c0_16 = arith.constant 0 : index
    %c0_17 = arith.constant 0 : index
    %c0_18 = arith.constant 0 : index
    %35 = vector.load %arg10[%c0_16, %c0_17, %c0_18] : memref<1x1x96xf32, #tpu.memory_space<vmem>>, vector<1x1x96xf32>
    %36 = vector.shape_cast %35 : vector<1x1x96xf32> to vector<1x96xf32>
    %37 = vector.broadcast %36 : vector<1x96xf32> to vector<17x96xf32>
    %38 = arith.addf %34, %37 : vector<17x96xf32>
    %c0_19 = arith.constant 0 : index
    %c0_20 = arith.constant 0 : index
    %c0_21 = arith.constant 0 : index
    %39 = vector.load %arg11[%c0_19, %c0_20, %c0_21] : memref<1x32x32xf32, #tpu.memory_space<vmem>>, vector<1x32x32xf32>
    %40 = vector.shape_cast %39 : vector<1x32x32xf32> to vector<32x32xf32>
    %cst_22 = arith.constant 0.000000e+00 : f32
    %41 = vector.broadcast %cst_22 : f32 to vector<17x32xf32>
    %42 = vector.extract_strided_slice %38 {offsets = [0, 0], sizes = [17, 16], strides = [1, 1]} : vector<17x96xf32> to vector<17x16xf32>
    %cst_23 = arith.constant 2.500000e-01 : f32
    %43 = vector.broadcast %cst_23 : f32 to vector<17x16xf32>
    %44 = arith.mulf %42, %43 : vector<17x16xf32>
    %45 = vector.extract_strided_slice %38 {offsets = [0, 32], sizes = [17, 16], strides = [1, 1]} : vector<17x96xf32> to vector<17x16xf32>
    %46 = vector.extract_strided_slice %38 {offsets = [0, 64], sizes = [17, 16], strides = [1, 1]} : vector<17x96xf32> to vector<17x16xf32>
    %47 = arith.truncf %44 : vector<17x16xf32> to vector<17x16xbf16>
    %48 = arith.truncf %45 : vector<17x16xf32> to vector<17x16xbf16>
    %cst_24 = arith.constant dense<0.000000e+00> : vector<17x17xf32>
    %49 = tpu.matmul %47, %48, %cst_24 {dimension_numbers = #tpu.dot_dimension_numbers<[1], [1], [0], [0], [0, 0, 1, 0], [], []>} : vector<17x16xbf16>, vector<17x16xbf16>, vector<17x17xf32> -> vector<17x17xf32>
    %cst_25 = arith.constant dense<0xFF800000> : vector<17xf32>
    %50 = vector.multi_reduction <maximumf>, %49, %cst_25 [1] : vector<17x17xf32> to vector<17xf32>
    %51 = vector.shape_cast %50 : vector<17xf32> to vector<17x1xf32>
    %52 = vector.broadcast %51 : vector<17x1xf32> to vector<17x17xf32>
    %53 = arith.subf %49, %52 : vector<17x17xf32>
    %54 = math.exp %53 : vector<17x17xf32>
    %cst_26 = arith.constant dense<0.000000e+00> : vector<17xf32>
    %55 = vector.multi_reduction <add>, %54, %cst_26 [1] : vector<17x17xf32> to vector<17xf32>
    %56 = vector.shape_cast %55 : vector<17xf32> to vector<17x1xf32>
    %57 = tpu.reciprocal %56 {approx = true} : vector<17x1xf32> -> vector<17x1xf32>
    %58 = vector.broadcast %57 : vector<17x1xf32> to vector<17x17xf32>
    %59 = arith.mulf %54, %58 : vector<17x17xf32>
    %60 = arith.truncf %59 : vector<17x17xf32> to vector<17x17xbf16>
    %61 = arith.truncf %46 : vector<17x16xf32> to vector<17x16xbf16>
    %cst_27 = arith.constant dense<0.000000e+00> : vector<17x16xf32>
    %62 = tpu.matmul %60, %61, %cst_27 {dimension_numbers = #tpu.dot_dimension_numbers<[1], [0], [0], [1], [0, 0, 1, 1], [], []>} : vector<17x17xbf16>, vector<17x16xbf16>, vector<17x16xf32> -> vector<17x16xf32>
    %63 = vector.extract_strided_slice %40 {offsets = [0, 0], sizes = [16, 32], strides = [1, 1]} : vector<32x32xf32> to vector<16x32xf32>
    %64 = arith.truncf %62 : vector<17x16xf32> to vector<17x16xbf16>
    %65 = arith.truncf %63 : vector<16x32xf32> to vector<16x32xbf16>
    %cst_28 = arith.constant dense<0.000000e+00> : vector<17x32xf32>
    %66 = tpu.matmul %64, %65, %cst_28 {dimension_numbers = #tpu.dot_dimension_numbers<[1], [0], [0], [1], [0, 0, 1, 1], [], []>} : vector<17x16xbf16>, vector<16x32xbf16>, vector<17x32xf32> -> vector<17x32xf32>
    %67 = arith.addf %41, %66 : vector<17x32xf32>
    %68 = vector.extract_strided_slice %38 {offsets = [0, 16], sizes = [17, 16], strides = [1, 1]} : vector<17x96xf32> to vector<17x16xf32>
    %cst_29 = arith.constant 2.500000e-01 : f32
    %69 = vector.broadcast %cst_29 : f32 to vector<17x16xf32>
    %70 = arith.mulf %68, %69 : vector<17x16xf32>
    %71 = vector.extract_strided_slice %38 {offsets = [0, 48], sizes = [17, 16], strides = [1, 1]} : vector<17x96xf32> to vector<17x16xf32>
    %72 = vector.extract_strided_slice %38 {offsets = [0, 80], sizes = [17, 16], strides = [1, 1]} : vector<17x96xf32> to vector<17x16xf32>
    %73 = arith.truncf %70 : vector<17x16xf32> to vector<17x16xbf16>
    %74 = arith.truncf %71 : vector<17x16xf32> to vector<17x16xbf16>
    %cst_30 = arith.constant dense<0.000000e+00> : vector<17x17xf32>
    %75 = tpu.matmul %73, %74, %cst_30 {dimension_numbers = #tpu.dot_dimension_numbers<[1], [1], [0], [0], [0, 0, 1, 0], [], []>} : vector<17x16xbf16>, vector<17x16xbf16>, vector<17x17xf32> -> vector<17x17xf32>
    %cst_31 = arith.constant dense<0xFF800000> : vector<17xf32>
    %76 = vector.multi_reduction <maximumf>, %75, %cst_31 [1] : vector<17x17xf32> to vector<17xf32>
    %77 = vector.shape_cast %76 : vector<17xf32> to vector<17x1xf32>
    %78 = vector.broadcast %77 : vector<17x1xf32> to vector<17x17xf32>
    %79 = arith.subf %75, %78 : vector<17x17xf32>
    %80 = math.exp %79 : vector<17x17xf32>
    %cst_32 = arith.constant dense<0.000000e+00> : vector<17xf32>
    %81 = vector.multi_reduction <add>, %80, %cst_32 [1] : vector<17x17xf32> to vector<17xf32>
    %82 = vector.shape_cast %81 : vector<17xf32> to vector<17x1xf32>
    %83 = tpu.reciprocal %82 {approx = true} : vector<17x1xf32> -> vector<17x1xf32>
    %84 = vector.broadcast %83 : vector<17x1xf32> to vector<17x17xf32>
    %85 = arith.mulf %80, %84 : vector<17x17xf32>
    %86 = arith.truncf %85 : vector<17x17xf32> to vector<17x17xbf16>
    %87 = arith.truncf %72 : vector<17x16xf32> to vector<17x16xbf16>
    %cst_33 = arith.constant dense<0.000000e+00> : vector<17x16xf32>
    %88 = tpu.matmul %86, %87, %cst_33 {dimension_numbers = #tpu.dot_dimension_numbers<[1], [0], [0], [1], [0, 0, 1, 1], [], []>} : vector<17x17xbf16>, vector<17x16xbf16>, vector<17x16xf32> -> vector<17x16xf32>
    %89 = vector.extract_strided_slice %40 {offsets = [16, 0], sizes = [16, 32], strides = [1, 1]} : vector<32x32xf32> to vector<16x32xf32>
    %90 = arith.truncf %88 : vector<17x16xf32> to vector<17x16xbf16>
    %91 = arith.truncf %89 : vector<16x32xf32> to vector<16x32xbf16>
    %cst_34 = arith.constant dense<0.000000e+00> : vector<17x32xf32>
    %92 = tpu.matmul %90, %91, %cst_34 {dimension_numbers = #tpu.dot_dimension_numbers<[1], [0], [0], [1], [0, 0, 1, 1], [], []>} : vector<17x16xbf16>, vector<16x32xbf16>, vector<17x32xf32> -> vector<17x32xf32>
    %93 = arith.addf %67, %92 : vector<17x32xf32>
    %94 = arith.addf %3, %93 : vector<17x32xf32>
    %c0_35 = arith.constant 0 : index
    %c0_36 = arith.constant 0 : index
    %c0_37 = arith.constant 0 : index
    %95 = vector.load %arg12[%c0_35, %c0_36, %c0_37] : memref<1x1x32xf32, #tpu.memory_space<vmem>>, vector<1x1x32xf32>
    %96 = vector.shape_cast %95 : vector<1x1x32xf32> to vector<1x32xf32>
    %97 = vector.broadcast %96 : vector<1x32xf32> to vector<17x32xf32>
    %98 = arith.addf %94, %97 : vector<17x32xf32>
    %c0_38 = arith.constant 0 : index
    %c0_39 = arith.constant 0 : index
    %c0_40 = arith.constant 0 : index
    %99 = vector.load %arg13[%c0_38, %c0_39, %c0_40] : memref<1x1x32xf32, #tpu.memory_space<vmem>>, vector<1x1x32xf32>
    %100 = vector.shape_cast %99 : vector<1x1x32xf32> to vector<1x32xf32>
    %c0_41 = arith.constant 0 : index
    %c0_42 = arith.constant 0 : index
    %c0_43 = arith.constant 0 : index
    %101 = vector.load %arg14[%c0_41, %c0_42, %c0_43] : memref<1x1x32xf32, #tpu.memory_space<vmem>>, vector<1x1x32xf32>
    %102 = vector.shape_cast %101 : vector<1x1x32xf32> to vector<1x32xf32>
    %cst_44 = arith.constant dense<0.000000e+00> : vector<17xf32>
    %103 = vector.multi_reduction <add>, %98, %cst_44 [1] : vector<17x32xf32> to vector<17xf32>
    %104 = vector.shape_cast %103 : vector<17xf32> to vector<17x1xf32>
    %cst_45 = arith.constant 3.200000e+01 : f32
    %105 = vector.broadcast %cst_45 : f32 to vector<17x1xf32>
    %106 = arith.divf %104, %105 : vector<17x1xf32>
    %107 = vector.broadcast %106 : vector<17x1xf32> to vector<17x32xf32>
    %108 = arith.subf %98, %107 : vector<17x32xf32>
    %109 = arith.mulf %108, %108 : vector<17x32xf32>
    %cst_46 = arith.constant dense<0.000000e+00> : vector<17xf32>
    %110 = vector.multi_reduction <add>, %109, %cst_46 [1] : vector<17x32xf32> to vector<17xf32>
    %111 = vector.shape_cast %110 : vector<17xf32> to vector<17x1xf32>
    %cst_47 = arith.constant 3.200000e+01 : f32
    %112 = vector.broadcast %cst_47 : f32 to vector<17x1xf32>
    %113 = arith.divf %111, %112 : vector<17x1xf32>
    %114 = vector.broadcast %106 : vector<17x1xf32> to vector<17x32xf32>
    %115 = arith.subf %98, %114 : vector<17x32xf32>
    %cst_48 = arith.constant 9.99999997E-7 : f32
    %116 = vector.broadcast %cst_48 : f32 to vector<17x1xf32>
    %117 = arith.addf %113, %116 : vector<17x1xf32>
    %118 = math.rsqrt %117 : vector<17x1xf32>
    %119 = vector.broadcast %118 : vector<17x1xf32> to vector<17x32xf32>
    %120 = arith.mulf %115, %119 : vector<17x32xf32>
    %121 = vector.broadcast %100 : vector<1x32xf32> to vector<17x32xf32>
    %122 = arith.mulf %120, %121 : vector<17x32xf32>
    %123 = vector.broadcast %102 : vector<1x32xf32> to vector<17x32xf32>
    %124 = arith.addf %122, %123 : vector<17x32xf32>
    %c0_49 = arith.constant 0 : index
    %c0_50 = arith.constant 0 : index
    %c0_51 = arith.constant 0 : index
    %125 = vector.load %arg15[%c0_49, %c0_50, %c0_51] : memref<1x32x128xf32, #tpu.memory_space<vmem>>, vector<1x32x128xf32>
    %126 = vector.shape_cast %125 : vector<1x32x128xf32> to vector<32x128xf32>
    %127 = arith.truncf %124 : vector<17x32xf32> to vector<17x32xbf16>
    %128 = arith.truncf %126 : vector<32x128xf32> to vector<32x128xbf16>
    %cst_52 = arith.constant dense<0.000000e+00> : vector<17x128xf32>
    %129 = tpu.matmul %127, %128, %cst_52 {dimension_numbers = #tpu.dot_dimension_numbers<[1], [0], [0], [1], [0, 0, 1, 1], [], []>} : vector<17x32xbf16>, vector<32x128xbf16>, vector<17x128xf32> -> vector<17x128xf32>
    %c0_53 = arith.constant 0 : index
    %c0_54 = arith.constant 0 : index
    %c0_55 = arith.constant 0 : index
    %130 = vector.load %arg16[%c0_53, %c0_54, %c0_55] : memref<1x1x128xf32, #tpu.memory_space<vmem>>, vector<1x1x128xf32>
    %131 = vector.shape_cast %130 : vector<1x1x128xf32> to vector<1x128xf32>
    %132 = vector.broadcast %131 : vector<1x128xf32> to vector<17x128xf32>
    %133 = arith.addf %129, %132 : vector<17x128xf32>
    %cst_56 = arith.constant 5.000000e-01 : f32
    %134 = vector.broadcast %cst_56 : f32 to vector<17x128xf32>
    %135 = arith.mulf %134, %133 : vector<17x128xf32>
    %cst_57 = arith.constant 0.707106769 : f32
    %136 = vector.broadcast %cst_57 : f32 to vector<17x128xf32>
    %137 = arith.mulf %133, %136 : vector<17x128xf32>
    %138 = math.erf %137 : vector<17x128xf32>
    %cst_58 = arith.constant 1.000000e+00 : f32
    %139 = vector.broadcast %cst_58 : f32 to vector<17x128xf32>
    %140 = arith.addf %139, %138 : vector<17x128xf32>
    %141 = arith.mulf %135, %140 : vector<17x128xf32>
    %c0_59 = arith.constant 0 : index
    %c0_60 = arith.constant 0 : index
    %c0_61 = arith.constant 0 : index
    %142 = vector.load %arg17[%c0_59, %c0_60, %c0_61] : memref<1x128x32xf32, #tpu.memory_space<vmem>>, vector<1x128x32xf32>
    %143 = vector.shape_cast %142 : vector<1x128x32xf32> to vector<128x32xf32>
    %144 = arith.truncf %141 : vector<17x128xf32> to vector<17x128xbf16>
    %145 = arith.truncf %143 : vector<128x32xf32> to vector<128x32xbf16>
    %cst_62 = arith.constant dense<0.000000e+00> : vector<17x32xf32>
    %146 = tpu.matmul %144, %145, %cst_62 {dimension_numbers = #tpu.dot_dimension_numbers<[1], [0], [0], [1], [0, 0, 1, 1], [], []>} : vector<17x128xbf16>, vector<128x32xbf16>, vector<17x32xf32> -> vector<17x32xf32>
    %c0_63 = arith.constant 0 : index
    %c0_64 = arith.constant 0 : index
    %c0_65 = arith.constant 0 : index
    %147 = vector.load %arg18[%c0_63, %c0_64, %c0_65] : memref<1x1x32xf32, #tpu.memory_space<vmem>>, vector<1x1x32xf32>
    %148 = vector.shape_cast %147 : vector<1x1x32xf32> to vector<1x32xf32>
    %149 = vector.broadcast %148 : vector<1x32xf32> to vector<17x32xf32>
    %150 = arith.addf %146, %149 : vector<17x32xf32>
    %151 = arith.addf %98, %150 : vector<17x32xf32>
    %c0_66 = arith.constant 0 : index
    %c0_67 = arith.constant 0 : index
    %152 = vector.load %arg24[%c0_66, %c0_67] : memref<17x32xf32, #tpu.memory_space<vmem>>, vector<17x32xf32>
    tpu.vector_store %arg24[%c0_66, %c0_67], %151 {strides = array<i32>} : memref<17x32xf32, #tpu.memory_space<vmem>>, vector<17x32xf32>,
    %c1_i32 = arith.constant 1 : i32
    %153 = arith.cmpi eq, %arg1, %c1_i32 : i32
    %154 = arith.extui %153 : i1 to i32
    %c0_i32_68 = arith.constant 0 : i32
    %155 = arith.cmpi ne, %154, %c0_i32_68 : i32
    scf.if %155 {
      %156 = vector.extract_strided_slice %151 {offsets = [16, 0], sizes = [1, 32], strides = [1, 1]} : vector<17x32xf32> to vector<1x32xf32>
      %c0_69 = arith.constant 0 : index
      %c0_70 = arith.constant 0 : index
      %157 = vector.load %arg19[%c0_69, %c0_70] : memref<1x32xf32, #tpu.memory_space<vmem>>, vector<1x32xf32>
      %c0_71 = arith.constant 0 : index
      %c0_72 = arith.constant 0 : index
      %158 = vector.load %arg20[%c0_71, %c0_72] : memref<1x32xf32, #tpu.memory_space<vmem>>, vector<1x32xf32>
      %cst_73 = arith.constant dense<0.000000e+00> : vector<1xf32>
      %159 = vector.multi_reduction <add>, %156, %cst_73 [1] : vector<1x32xf32> to vector<1xf32>
      %160 = vector.shape_cast %159 : vector<1xf32> to vector<1x1xf32>
      %cst_74 = arith.constant 3.200000e+01 : f32
      %161 = vector.broadcast %cst_74 : f32 to vector<1x1xf32>
      %162 = arith.divf %160, %161 : vector<1x1xf32>
      %163 = vector.broadcast %162 : vector<1x1xf32> to vector<1x32xf32>
      %164 = arith.subf %156, %163 : vector<1x32xf32>
      %165 = arith.mulf %164, %164 : vector<1x32xf32>
      %cst_75 = arith.constant dense<0.000000e+00> : vector<1xf32>
      %166 = vector.multi_reduction <add>, %165, %cst_75 [1] : vector<1x32xf32> to vector<1xf32>
      %167 = vector.shape_cast %166 : vector<1xf32> to vector<1x1xf32>
      %cst_76 = arith.constant 3.200000e+01 : f32
      %168 = vector.broadcast %cst_76 : f32 to vector<1x1xf32>
      %169 = arith.divf %167, %168 : vector<1x1xf32>
      %170 = vector.broadcast %162 : vector<1x1xf32> to vector<1x32xf32>
      %171 = arith.subf %156, %170 : vector<1x32xf32>
      %cst_77 = arith.constant 9.99999997E-7 : f32
      %172 = vector.broadcast %cst_77 : f32 to vector<1x1xf32>
      %173 = arith.addf %169, %172 : vector<1x1xf32>
      %174 = math.rsqrt %173 : vector<1x1xf32>
      %175 = vector.broadcast %174 : vector<1x1xf32> to vector<1x32xf32>
      %176 = arith.mulf %171, %175 : vector<1x32xf32>
      %177 = arith.mulf %176, %157 : vector<1x32xf32>
      %178 = arith.addf %177, %158 : vector<1x32xf32>
      %c0_78 = arith.constant 0 : index
      %c0_79 = arith.constant 0 : index
      %179 = vector.load %arg21[%c0_78, %c0_79] : memref<32x10xf32, #tpu.memory_space<vmem>>, vector<32x10xf32>
      %180 = arith.truncf %178 : vector<1x32xf32> to vector<1x32xbf16>
      %181 = arith.truncf %179 : vector<32x10xf32> to vector<32x10xbf16>
      %cst_80 = arith.constant dense<0.000000e+00> : vector<1x10xf32>
      %182 = tpu.matmul %180, %181, %cst_80 {dimension_numbers = #tpu.dot_dimension_numbers<[1], [0], [0], [1], [0, 0, 1, 1], [], []>} : vector<1x32xbf16>, vector<32x10xbf16>, vector<1x10xf32> -> vector<1x10xf32>
      %c0_81 = arith.constant 0 : index
      %c0_82 = arith.constant 0 : index
      %183 = vector.load %arg22[%c0_81, %c0_82] : memref<1x10xf32, #tpu.memory_space<vmem>>, vector<1x10xf32>
      %184 = arith.addf %182, %183 : vector<1x10xf32>
      %c0_83 = arith.constant 0 : index
      %c0_84 = arith.constant 0 : index
      %c0_85 = arith.constant 0 : index
      %185 = vector.load %arg23[%c0_83, %c0_84, %c0_85] : memref<1x1x10xf32, #tpu.memory_space<vmem>>, vector<1x1x10xf32>
      %186 = vector.shape_cast %185 : vector<1x1x10xf32> to vector<1x10xf32>
      %187 = vector.shape_cast %184 : vector<1x10xf32> to vector<1x1x10xf32>
      tpu.vector_store %arg23[%c0_83, %c0_84, %c0_85], %187 {strides = array<i32>} : memref<1x1x10xf32, #tpu.memory_space<vmem>>, vector<1x1x10xf32>,
    } else {
    }
    return
  }
  func.func @transform_0(%arg0: i32, %arg1: i32) -> (i32, i32, i32) {
    %c0_i32 = arith.constant 0 : i32
    %c0_i32_0 = arith.constant 0 : i32
    %c0_i32_1 = arith.constant 0 : i32
    return %arg0, %c0_i32, %c0_i32_0 : i32, i32, i32
  }
  func.func @transform_1(%arg0: i32, %arg1: i32) -> (i32, i32) {
    %c0_i32 = arith.constant 0 : i32
    %c0_i32_0 = arith.constant 0 : i32
    %c0_i32_1 = arith.constant 0 : i32
    return %c0_i32, %c0_i32_0 : i32, i32
  }
  func.func @transform_2(%arg0: i32, %arg1: i32) -> (i32, i32) {
    %c0_i32 = arith.constant 0 : i32
    %c0_i32_0 = arith.constant 0 : i32
    %c0_i32_1 = arith.constant 0 : i32
    return %c0_i32, %c0_i32_0 : i32, i32
  }
  func.func @transform_3(%arg0: i32, %arg1: i32) -> (i32, i32) {
    %c0_i32 = arith.constant 0 : i32
    %c0_i32_0 = arith.constant 0 : i32
    %c0_i32_1 = arith.constant 0 : i32
    return %c0_i32, %c0_i32_0 : i32, i32
  }
  func.func @transform_4(%arg0: i32, %arg1: i32) -> (i32, i32) {
    %c0_i32 = arith.constant 0 : i32
    %c0_i32_0 = arith.constant 0 : i32
    %c0_i32_1 = arith.constant 0 : i32
    return %c0_i32, %c0_i32_0 : i32, i32
  }
  func.func @transform_5(%arg0: i32, %arg1: i32) -> (i32, i32, i32) {
    %c0_i32 = arith.constant 0 : i32
    %c0_i32_0 = arith.constant 0 : i32
    %c0_i32_1 = arith.constant 0 : i32
    return %arg1, %c0_i32, %c0_i32_0 : i32, i32, i32
  }
  func.func @transform_6(%arg0: i32, %arg1: i32) -> (i32, i32, i32) {
    %c0_i32 = arith.constant 0 : i32
    %c0_i32_0 = arith.constant 0 : i32
    %c0_i32_1 = arith.constant 0 : i32
    return %arg1, %c0_i32, %c0_i32_0 : i32, i32, i32
  }
  func.func @transform_7(%arg0: i32, %arg1: i32) -> (i32, i32, i32) {
    %c0_i32 = arith.constant 0 : i32
    %c0_i32_0 = arith.constant 0 : i32
    %c0_i32_1 = arith.constant 0 : i32
    return %arg1, %c0_i32, %c0_i32_0 : i32, i32, i32
  }
  func.func @transform_8(%arg0: i32, %arg1: i32) -> (i32, i32, i32) {
    %c0_i32 = arith.constant 0 : i32
    %c0_i32_0 = arith.constant 0 : i32
    %c0_i32_1 = arith.constant 0 : i32
    return %arg1, %c0_i32, %c0_i32_0 : i32, i32, i32
  }
  func.func @transform_9(%arg0: i32, %arg1: i32) -> (i32, i32, i32) {
    %c0_i32 = arith.constant 0 : i32
    %c0_i32_0 = arith.constant 0 : i32
    %c0_i32_1 = arith.constant 0 : i32
    return %arg1, %c0_i32, %c0_i32_0 : i32, i32, i32
  }
  func.func @transform_10(%arg0: i32, %arg1: i32) -> (i32, i32, i32) {
    %c0_i32 = arith.constant 0 : i32
    %c0_i32_0 = arith.constant 0 : i32
    %c0_i32_1 = arith.constant 0 : i32
    return %arg1, %c0_i32, %c0_i32_0 : i32, i32, i32
  }
  func.func @transform_11(%arg0: i32, %arg1: i32) -> (i32, i32, i32) {
    %c0_i32 = arith.constant 0 : i32
    %c0_i32_0 = arith.constant 0 : i32
    %c0_i32_1 = arith.constant 0 : i32
    return %arg1, %c0_i32, %c0_i32_0 : i32, i32, i32
  }
  func.func @transform_12(%arg0: i32, %arg1: i32) -> (i32, i32, i32) {
    %c0_i32 = arith.constant 0 : i32
    %c0_i32_0 = arith.constant 0 : i32
    %c0_i32_1 = arith.constant 0 : i32
    return %arg1, %c0_i32, %c0_i32_0 : i32, i32, i32
  }
  func.func @transform_13(%arg0: i32, %arg1: i32) -> (i32, i32, i32) {
    %c0_i32 = arith.constant 0 : i32
    %c0_i32_0 = arith.constant 0 : i32
    %c0_i32_1 = arith.constant 0 : i32
    return %arg1, %c0_i32, %c0_i32_0 : i32, i32, i32
  }
  func.func @transform_14(%arg0: i32, %arg1: i32) -> (i32, i32, i32) {
    %c0_i32 = arith.constant 0 : i32
    %c0_i32_0 = arith.constant 0 : i32
    %c0_i32_1 = arith.constant 0 : i32
    return %arg1, %c0_i32, %c0_i32_0 : i32, i32, i32
  }
  func.func @transform_15(%arg0: i32, %arg1: i32) -> (i32, i32, i32) {
    %c0_i32 = arith.constant 0 : i32
    %c0_i32_0 = arith.constant 0 : i32
    %c0_i32_1 = arith.constant 0 : i32
    return %arg1, %c0_i32, %c0_i32_0 : i32, i32, i32
  }
  func.func @transform_16(%arg0: i32, %arg1: i32) -> (i32, i32, i32) {
    %c0_i32 = arith.constant 0 : i32
    %c0_i32_0 = arith.constant 0 : i32
    %c0_i32_1 = arith.constant 0 : i32
    return %arg1, %c0_i32, %c0_i32_0 : i32, i32, i32
  }
  func.func @transform_17(%arg0: i32, %arg1: i32) -> (i32, i32) {
    %c0_i32 = arith.constant 0 : i32
    %c0_i32_0 = arith.constant 0 : i32
    %c0_i32_1 = arith.constant 0 : i32
    return %c0_i32, %c0_i32_0 : i32, i32
  }
  func.func @transform_18(%arg0: i32, %arg1: i32) -> (i32, i32) {
    %c0_i32 = arith.constant 0 : i32
    %c0_i32_0 = arith.constant 0 : i32
    %c0_i32_1 = arith.constant 0 : i32
    return %c0_i32, %c0_i32_0 : i32, i32
  }
  func.func @transform_19(%arg0: i32, %arg1: i32) -> (i32, i32) {
    %c0_i32 = arith.constant 0 : i32
    %c0_i32_0 = arith.constant 0 : i32
    %c0_i32_1 = arith.constant 0 : i32
    return %c0_i32, %c0_i32_0 : i32, i32
  }
  func.func @transform_20(%arg0: i32, %arg1: i32) -> (i32, i32) {
    %c0_i32 = arith.constant 0 : i32
    %c0_i32_0 = arith.constant 0 : i32
    %c0_i32_1 = arith.constant 0 : i32
    return %c0_i32, %c0_i32_0 : i32, i32
  }
  func.func @transform_21(%arg0: i32, %arg1: i32) -> (i32, i32, i32) {
    %c0_i32 = arith.constant 0 : i32
    %c0_i32_0 = arith.constant 0 : i32
    %c0_i32_1 = arith.constant 0 : i32
    return %arg0, %c0_i32, %c0_i32_0 : i32, i32, i32
  }
}

</mosaic_0001>

<bundles_post_ra>
// kernel: _lambda_.1
= control target key start
LH: loop header
LB: loop body
LE: loop exit
PB: predicated region body
PF: predicated region fallthrough
CT: control target
= control target key end

     0   :  { %s3012_s0 = inlined_call_operand.vmem [shape: f32[2,16,48], index: 0, kind: input, shape index: {}]   ;;  %s3013_s1 = inlined_call_operand.vmem [shape: f32[48,32], index: 1, kind: input, shape index: {}]   ;;  %s3014_s2 = inlined_call_operand.vmem [shape: f32[1,32], index: 2, kind: input, shape index: {}]   ;;  %s3015_s3 = inlined_call_operand.vmem [shape: f32[1,32], index: 3, kind: input, shape index: {}]   ;;  %s3016_s4 = inlined_call_operand.vmem [shape: f32[16,32], index: 4, kind: input, shape index: {}]   ;;  %s3017_s5 = inlined_call_operand.vmem [shape: f32[2,1,32], index: 5, kind: input, shape index: {}]   ;;  %s3018_s6 = inlined_call_operand.vmem [shape: f32[2,1,32], index: 6, kind: input, shape index: {}]   ;;  %s3019_s7 = inlined_call_operand.vmem [shape: f32[2,32,96], index: 7, kind: input, shape index: {}]   ;;  %s3020_s8 = inlined_call_operand.vmem [shape: f32[2,1,96], index: 8, kind: input, shape index: {}]   ;;  %s3021_s9 = inlined_call_operand.vmem [shape: f32[2,32,32], index: 9, kind: input, shape index: {}]   ;;  %s3022_s10 = inlined_call_operand.vmem [shape: f32[2,1,32], index: 10, kind: input, shape index: {}]   ;;  %s3023_s11 = inlined_call_operand.vmem [shape: f32[2,1,32], index: 11, kind: input, shape index: {}]   ;;  %s3024_s12 = inlined_call_operand.vmem [shape: f32[2,1,32], index: 12, kind: input, shape index: {}]   ;;  %s3025_s13 = inlined_call_operand.vmem [shape: f32[2,32,128], index: 13, kind: input, shape index: {}]   ;;  %s3026_s14 = inlined_call_operand.vmem [shape: f32[2,1,128], index: 14, kind: input, shape index: {}]   ;;  %s3027_s15 = inlined_call_operand.vmem [shape: f32[2,128,32], index: 15, kind: input, shape index: {}]   ;;  %s3028_s16 = inlined_call_operand.vmem [shape: f32[2,1,32], index: 16, kind: input, shape index: {}]   ;;  %s3029_s17 = inlined_call_operand.vmem [shape: f32[1,32], index: 17, kind: input, shape index: {}]   ;;  %s3030_s18 = inlined_call_operand.vmem [shape: f32[1,32], index: 18, kind: input, shape index: {}]   ;;  %s3031_s19 = inlined_call_operand.vmem [shape: f32[32,10], index: 19, kind: input, shape index: {}]   ;;  %s3032_s20 = inlined_call_operand.vmem [shape: f32[1,10], index: 20, kind: input, shape index: {}]   ;;  %s3033_s21 = inlined_call_operand.hbm [shape: f32[2,1,10], index: 21, kind: output, shape index: {}]  }
   0x1   :  { %3050 = sst [smem:[#allocation18_spill]] %s3012_s0 }
   0x2   :  { %3051 = sst [smem:[#allocation19_spill]] %s3013_s1 }
   0x3   :  { %3052 = sst [smem:[#allocation20_spill]] %s3014_s2 }
   0x4   :  { %3053 = sst [smem:[#allocation21_spill]] %s3015_s3 }
   0x5   :  { %3054 = sst [smem:[#allocation22_spill]] %s3016_s4 }
   0x6   :  { %3055 = sst [smem:[#allocation23_spill]] %s3017_s5 }
   0x7   :  { %3056 = sst [smem:[#allocation24_spill]] %s3019_s7 }
   0x8   :  { %3057 = sst [smem:[#allocation25_spill]] %s3021_s9 }
   0x9   :  { %3058 = sst [smem:[#allocation26_spill]] %s3029_s17 }
   0xa   :  { %3059 = sst [smem:[#allocation27_spill]] %s3030_s18 }
   0xb   :  { %3060 = sst [smem:[#allocation28_spill]] %s3031_s19 }
   0xc   :  { %3061 = sst [smem:[#allocation29_spill]] %s3032_s20 }
   0xd   :  { %3062 = sst [smem:[#allocation30_spill]] %s3033_s21 }
   0xe   :  { %26 = vsyncpa [#allocation4], 0 }
   0xf   :  { %28 = vsyncpa [#allocation4 + $0x1], 0  ;;  %s2591_s2 = smov 0   ;;  %s2593_s25 = smov 0  }
  0x10   :  { %s2595_s26 = smov 0   ;;  %s2597_s27 = smov 0  }
  0x11   :  { %s2599_s3 = smov 0   ;;  %s2601_s28 = smov 0  }
  0x12   :  { %s2603_s29 = smov 0   ;;  %s2605_s0 = smov 0  }
  0x13 LB: > { %3063 = sst [smem:[#allocation6_spill]] %s2440_s2  ;;  %s2048_s4 = sadd.s32 4294967295, %s2468_s0   ;;  %s2468_s0 = sphi %s2605_s0, %s34_s0   ;;  %s2464_s29 = sphi %s2603_s29, %s3115_s29   ;;  %s2460_s28 = sphi %s2601_s28, %s3114_s28   ;;  %s2456_s3 = sphi %s2599_s3, %s3113_s3   ;;  %s2452_s27 = sphi %s2597_s27, %s3112_s27   ;;  %s2448_s26 = sphi %s2595_s26, %s3111_s26   ;;  %s2444_s25 = sphi %s2593_s25, %s3117_s25   ;;  %s2440_s2 = sphi %s2591_s2, %s3116_s2  }
  0x14   : > { %3064 = sst [smem:[#allocation7_spill]] %s2448_s26  ;;  %s2049_s30 = sadd.s32 4294967294, %s2468_s0  }
  0x15   : > { %3065 = sst [smem:[#allocation8_spill]] %s2452_s27  ;;  %s43_s5 = sadd.s32 1, %s2460_s28 }
  0x16   : > { %3066 = sst [smem:[#allocation9_spill]] %s2456_s3  ;;  %p44_p0 = scmp.ge.s32.totalorder %s43_s5, 2 }
  0x17   : > { %3067 = sst [smem:[#allocation10_spill]] %s2460_s28  ;;  %s46_s22 = sadd.s32 1, %s2464_s29 }
  0x18   : > { %3068 = sst [smem:[#allocation11_spill]] %s2464_s29  ;;  %p569_p1 = scmp.ne.s32.totalorder %s2448_s26, %s2444_s25 }
  0x19   : > { %3069 = sst [smem:[#allocation12_spill]] %s2468_s0  ;;  %p570_p2 = scmp.eq.s32.totalorder %s2048_s4, 3 }
  0x1a   : > { %s3119_s5 = smov (%p44_p0, %s43_s5), 0  ;;  %s3121_s22 = smov (!%p44_p0, %s46_s22), %s2464_s29 }
  0x1b   : > { %3070 = sst [smem:[#allocation13_spill]] %s3119_s5  ;;  %p2640_p3 = por %p570_p2, %p569_p1 }
  0x1c   : > { %p575_p4 = scmp.ne.s32.totalorder %s2444_s25, %s2440_s2  ;;  %p48_p5 = scmp.ge.s32.totalorder %s3121_s22, 2 }
  0x1d   : > { %s3071_s23 = scalar_select %p2640_p3, 1, 0 }
  0x1e   : > { %p576_p6 = scmp.eq.s32.totalorder %s2049_s30, 3  ;;  %p2052_p7 = scmp.ge.s32.totalorder %s2468_s0, 1 }
  0x1f   : > { %3072 = sst [smem:[#allocation14_spill]] %s3071_s23  ;;  %p706_p8 = scmp.lt.s32.totalorder %s2468_s0, 5 }
  0x20   : > { %s3123_s22 = smov (%p48_p5, %s3121_s22), 0  ;;  %p2650_p9 = por %p576_p6, %p575_p4 }
  0x21   : > { %3073 = sst [smem:[#allocation15_spill]] %s3123_s22  ;;  %p707_p10 = pnand %p2052_p7, %p706_p8 }
  0x22   : > { %s3074_s1 = scalar_select %p2650_p9, 1, 0 }
  0x23   : > { %s556_s24 = ssub.s32 %s2464_s29, %s3123_s22  ;;  %s559_s4 = sadd.s32 1, %s2448_s26 }
  0x24   : > { %3075 = sst [smem:[#allocation16_spill]] %s3074_s1  ;;  %p557_p11 = scmp.eq.s32.totalorder %s556_s24, 0 }
  0x25   : > { %710 = sbr.rel (%p707_p10) target bundleno = 3343 (0xd0f), region = 104  ;;  %p809_p12 = scmp.lt.s32.totalorder (!%p707_p10), %s2456_s3, 1 }
  0x26   : > { %s2658_s5 = scalar_select %p557_p11, %s2448_s26, %s559_s4  }
  0x27   : > { %p814_p13 = scmp.lt.s32.totalorder (!%p707_p10), %s2452_s27, 1  ;;  %s3077_s29 = sld [smem:[#allocation18_spill]] (!%p707_p10) }
  0x28   : > { %3076 = sst [smem:[#allocation17_spill]] %s2658_s5  ;;  %s3079_s7 = sld [smem:[#allocation24_spill]] (!%p707_p10) }
  0x29   : > { %s3080_s9 = sld [smem:[#allocation25_spill]] (!%p707_p10)  ;;  %s3081_s17 = sand.u32 (!%p707_p10), 1, %s2444_s25  }
  0x2a   : > { %s2728_s18 = scalar_lea.vmem (!%p707_p10), [#allocation3], %s3081_s17 }
  0x2c   : > { %s810_s28 = scalar_select %p809_p12, %s2456_s3, 1 }
  0x2d   : > { %s2665_s2 = scalar_select %p814_p13, %s2452_s27, 1 }
  0x2e   : > { %s2095_s24 = sshll.u32 %s810_s28, 4 }
  0x2f   : > { %s2670_s30 = scalar_lea.vmem %s3077_s29, %s2095_s24  ;;  %s2096_s20 = sshll.u32 %s2665_s2, 5 }
  0x30   : > { %s2684_s19 = scalar_lea.vmem %s3079_s7, %s2096_s20  ;;  %s2693_s4 = scalar_lea.vmem %s3080_s9, %s2096_s20 }
  0x31   : > { %s2710_s28 = scalar_lea.vmem %s3025_s13, %s2096_s20  ;;  %s2099_s9 = sshll.u32 %s2665_s2, 7 }
  0x32   : > { %s857_s21 = scalar_lea.vmem %s3028_s16, %s2665_s2  ;;  %s2724_s3 = scalar_lea.vmem %s3027_s15, %s2099_s9 }
  0x33   : > { %s3082_s7 = sld [smem:[#allocation8_spill]] }
  0x39   : > { %p2063_p0 = scmp.ne.s32.totalorder %s3082_s7, 0 }
  0x3a   : > { %s3083_s29 = sld [smem:[#allocation19_spill]] (!%p2063_p0)  ;;  %v2470_v3 = vmov (!%p2063_p0), 0.0   ;;  %vm2471_vm0 = vmmov (!%p2063_p0), 0   ;;  %v863_v10 = vld [vmem:[%s2670_s30] sm:$0xff] (!%p2063_p0)  ;;  %v864_v11 = vld [vmem:[%s2670_s30 + $0x8] sm:$0xff] (!%p2063_p0)  ;;  %vm882_vm1 = vcmask (!%p2063_p0), 392192  }
  0x3b   : > { %862 = sbr.rel (%p2063_p0) target bundleno = 298 (0x12a), region = 108  ;;  %2147 = vmatprep.subr.bf16.mxu0 (!%p2063_p0), %v2470_v3  ;;  %2153 = vmatprep.mubr.msk.bf16.mxu0 (!%p2063_p0), %vm2471_vm0, %v2470_v3  ;;  %v871_v12 = vpack.c.bf16 (!%p2063_p0), %v864_v11, %v863_v10  ;;  %s3085_s27 = sld [smem:[#allocation21_spill]] (!%p2063_p0)  ;;  %vm935_vm2 = vcmask (!%p2063_p0), 253952   ;;  %vm931_vm3 = vcmask (!%p2063_p0), 261120  }
  0x3c   : > { %s3086_s5 = sld [smem:[#allocation20_spill]] (!%p2063_p0)  ;;  %s3087_s0 = sld [smem:[#allocation22_spill]] (!%p2063_p0) }
  0x40   : > { %s3084_s24 = smov (!%p2063_p0), %s3083_s29  ;;  %v865_v0 = vld [vmem:[%s3083_s29] sm:$0xff] (!%p2063_p0) }
  0x41   : > { %v866_v1 = vld [vmem:[%s3084_s24 + $0x8] sm:$0xff] (!%p2063_p0)  ;;  %v867_v2 = vld [vmem:[%s3084_s24 + $0x10] sm:$0xff] (!%p2063_p0)  ;;  %v868_v5 = vld [vmem:[%s3084_s24 + $0x18] sm:$0xff] (!%p2063_p0) }
  0x42   : > { %v872_v4 = vpack.c.bf16 %v866_v1, %v865_v0  ;;  %v873_v6 = vpack.c.bf16 %v868_v5, %v867_v2  ;;  %v869_v7 = vld [vmem:[%s3084_s24 + $0x20] sm:$0xff]  ;;  %v870_v8 = vld [vmem:[%s3084_s24 + $0x28] sm:$0xff]  ;;  %s3088_s22 = smov %s3087_s0 }
  0x43   : > { %v874_v9 = vpack.c.bf16 %v870_v8, %v869_v7  ;;  %v934_v13 = vld [vmem:[%s3085_s27] sm:$0x1]  ;;  %v928_v20 = vld [vmem:[%s3088_s22 + $0x8] sm:$0xff] }
  0x44   : > { %2148 = vmatpush3.bf16.msra.mxu0 %v872_v4  ;;  %936 = vst.msk [vmem:[#allocation2 + $0x10] sm:$0x1] %vm935_vm2, %v934_v13  ;;  %v2064_v14 = vld [vmem:[%s3086_s5] ss:$0 sm:$0xff] }
  0x45   : > { %2149 = vmatprep.subr.bf16.mxu0 %v2470_v3  ;;  %v927_v16 = vld [vmem:[%s3087_s0] sm:$0xff] }
  0x48   : > { %2150 = vmatpush3.bf16.msra.mxu0 %v873_v6 }
  0x49   : > { %2151 = vmatprep.subr.bf16.mxu0 %v2470_v3 }
  0x4c   : > { %2152 = vmatpush3.bf16.msra.mxu0 %v874_v9 }
  0x4f   : > { %2154 = vmatmul.mubr.msk.bf16.vlgmr.msra.gmra.mrb[0].mxu0 %vm882_vm1, %v871_v12 }
 0x122   : > { %v920_v15 = vpop.f32.mrb[0].mxu0 }
 0x123   : > { %v921_v17 = vadd.f32 %v2064_v14, %v920_v15  ;;  %v2155_v18 = vpop.f32.mrb[1].mxu0 }
 0x124   : > { %v923_v19 = vpop.f32.mrb[2].mxu0 }
 0x125   : > { %v929_v21 = vadd.f32 %v927_v16, %v921_v17  ;;  %v924_v22 = vadd.f32 %v2064_v14, %v923_v19  ;;  %v2156_v23 = vpop.f32.mrb[3].mxu0 }
 0x127   : > { %932 = vst.msk [vmem:[#allocation2] sm:$0xff] %vm931_vm3, %v929_v21  ;;  %v930_v24 = vadd.f32 %v928_v20, %v924_v22 }
 0x129   : > { %933 = vst.msk [vmem:[#allocation2 + $0x8] sm:$0xff] %vm931_vm3, %v930_v24 }
 0x12a PF: > { %vm942_vm4 = vcmask 261120   ;;  %v2765_v26 = vld [vmem:[#allocation2 + $0x10] sm:$0x1]  ;;  %vm949_vm5 = vcmask 253952   ;;  %v1002_v46 = vld [vmem:[%s2684_s19] sm:$0xff]  ;;  %v1003_v47 = vld [vmem:[%s2684_s19 + $0x8] sm:$0xff]  ;;  %s3091_s26 = scalar_lea.vmem %s3018_s6, %s2665_s2  ;;  %s3092_s23 = scalar_lea.vmem %s3020_s8, %s2665_s2 }
 0x12b   : > { %v950_v29 = vsel %vm949_vm5, %v2765_v26, 0.0  ;;  %v1004_v48 = vld [vmem:[%s2684_s19 + $0x10] sm:$0xff]  ;;  %v1008_v49 = vpack.c.bf16 %v1003_v47, %v1002_v46  ;;  %v1005_v50 = vld [vmem:[%s2684_s19 + $0x18] sm:$0xff]  ;;  %s3089_s7 = sld [smem:[#allocation23_spill]]  ;;  %v2067_v5 = vld [vmem:[%s3091_s26] ss:$0 sm:$0xff]  ;;  %s3094_s29 = scalar_lea.vmem %s3023_s11, %s2665_s2 }
 0x12c   : > { %951 = vadd.xlane.f32.xlu1 %v950_v29  ;;  %v1009_v51 = vpack.c.bf16 %v1005_v50, %v1004_v48  ;;  %v2068_v13 = vld [vmem:[%s3092_s23] ss:$0 sm:$0xff]  ;;  %s2472_s0 = smov 96   ;;  %vm1088_vm6 = vcmask 130048   ;;  %s2473_s30 = smov 80   ;;  %vm1149_vm7 = vcmask 138240  }
 0x12d   : > { %2157 = vmatprep.subr.bf16.mxu0 %v1008_v49  ;;  %s2474_s1 = smov 112   ;;  %vm1156_vm8 = vcmask 131072   ;;  %s2475_s19 = smov 48   ;;  %vm1197_vm9 = vcmask 1040384  }
 0x12e   : > { %v2763_v25 = vld [vmem:[#allocation2] sm:$0xff]  ;;  %2158 = vmatpush3.bf16.msra.mxu0 %v1008_v49  ;;  %s2476_s17 = smov 64   ;;  %s3095_s9 = scalar_lea.vmem %s3024_s12, %s2665_s2 }
 0x12f   : > { %v943_v28 = vsel %vm942_vm4, %v2763_v25, 0.0  ;;  %2159 = vmatprep.subr.bf16.mxu0 %v1009_v51 }
 0x130   : > { %v2767_v27 = vld [vmem:[#allocation2 + $0x8] sm:$0xff]  ;;  %944 = vadd.xlane.f32.xlu0 %v943_v28 }
 0x131   : > { %v946_v30 = vsel %vm942_vm4, %v2767_v27, 0.0  ;;  %s3090_s20 = scalar_lea.vmem %s3089_s7, %s2665_s2 }
 0x132   : > { %2160 = vmatpush3.bf16.msra.mxu0 %v1009_v51  ;;  %v2066_v63 = vld [vmem:[%s3090_s20] ss:$0 sm:$0xff]  ;;  %s3093_s20 = scalar_lea.vmem %s3022_s10, %s2665_s2 }
 0x134   : > { %947 = vadd.xlane.f32.xlu0 %v946_v30 }
 0x1b9   : > { %v952_v32 = vpop.xlane.xlu1 %951 }
 0x1ba   : > { %v956_v34 = vmul.f32 0.03125, %v952_v32 }
 0x1bc   : > { %v959_v36 = vsub.f32 %v2765_v26, %v956_v34 }
 0x1bd   : > { %v945_v31 = vpop.xlane.xlu0 %944 }
 0x1be   : > { %v954_v33 = vmul.f32 0.03125, %v945_v31  ;;  %v962_v40 = vmul.f32 %v959_v36, %v959_v36 }
 0x1c0   : > { %v957_v35 = vsub.f32 %v2763_v25, %v954_v33  ;;  %v969_v43 = vsel %vm949_vm5, %v962_v40, 0.0 }
 0x1c1   : > { %v948_v37 = vpop.xlane.xlu0 %947 }
 0x1c2   : > { %v955_v38 = vmul.f32 0.03125, %v948_v37  ;;  %v960_v39 = vmul.f32 %v957_v35, %v957_v35 }
 0x1c4   : > { %v958_v41 = vsub.f32 %v2767_v27, %v955_v38  ;;  %v963_v42 = vsel %vm942_vm4, %v960_v39, 0.0 }
 0x1c5   : > { %964 = vadd.xlane.f32.xlu1 %v963_v42 }
 0x1c6   : > { %v961_v44 = vmul.f32 %v958_v41, %v958_v41 }
 0x1c8   : > { %v966_v45 = vsel %vm942_vm4, %v961_v44, 0.0 }
 0x1c9   : > { %970 = vadd.xlane.f32.xlu1 %v969_v43  ;;  %967 = vadd.xlane.f32.xlu0 %v966_v45 }
 0x252   : > { %v965_v52 = vpop.xlane.xlu1 %964 }
 0x253   : > { %v972_v53 = vmul.f32 0.03125, %v965_v52 }
 0x255   : > { %v975_v54 = vadd.f32 1e-06, %v972_v53 }
 0x256   : > { %v971_v55 = vpop.xlane.xlu1 %970  ;;  %v968_v56 = vpop.xlane.xlu0 %967 }
 0x257   : > { %2330 = vrsqrt.f32 %v975_v54  ;;  %v974_v57 = vmul.f32 0.03125, %v971_v55  ;;  %v973_v58 = vmul.f32 0.03125, %v968_v56 }
 0x259   : > { %v977_v59 = vadd.f32 1e-06, %v974_v57  ;;  %v976_v60 = vadd.f32 1e-06, %v973_v58 }
 0x25b   : > { %2332 = vrsqrt.f32 %v977_v59 }
 0x25c   : > { %2334 = vrsqrt.f32 %v976_v60 }
 0x261   : > { %v2331_v61 = vpop.eup %2330 }
 0x262   : > { %v981_v62 = vmul.f32 %v2331_v61, %v957_v35 }
 0x264   : > { %v990_v4 = vmul.f32 %v2066_v63, %v981_v62 }
 0x265   : > { %v2333_v0 = vpop.eup %2332 }
 0x266   : > { %v2335_v1 = vpop.eup %2334  ;;  %v983_v2 = vmul.f32 %v2333_v0, %v959_v36  ;;  %v999_v9 = vadd.f32 %v2067_v5, %v990_v4 }
 0x267   : > { %v982_v3 = vmul.f32 %v2335_v1, %v958_v41 }
 0x268   : > { %v992_v6 = vmul.f32 %v2066_v63, %v983_v2 }
 0x269   : > { %v991_v7 = vmul.f32 %v2066_v63, %v982_v3 }
 0x26a   : > { %v1001_v8 = vadd.f32 %v2067_v5, %v992_v6 }
 0x26b   : > { %v1000_v10 = vadd.f32 %v2067_v5, %v991_v7 }
 0x26c   : > { %v1007_v11 = vpack.c.bf16 %v1001_v8, %v1001_v8 }
 0x26d   : > { %v1006_v12 = vpack.c.bf16 %v1000_v10, %v999_v9 }
 0x26f   : > { %2161 = vmatprep.mubr.msk.bf16.mxu0 %vm942_vm4, %v1006_v12 }
 0x270   : > { %2162 = vmatmul.mubr.msk.bf16.vlgmr.msra.gmra.mrb[0].mxu0 %vm942_vm4, %v1007_v11 }
 0x343   : > { %v2163_v14 = vpop.f32.mrb[0].mxu0 }
 0x344   : > { %v1066_v15 = vadd.f32 %v2163_v14, %v2068_v13  ;;  %v1057_v16 = vpop.f32.mrb[1].mxu0 }
 0x345   : > { %v1058_v17 = vadd.f32 %v2068_v13, %v1057_v16  ;;  %v2164_v18 = vpop.f32.mrb[2].mxu0 }
 0x346   : > { %v2802_v19 = vpack.c.bf16 %v1066_v15, %v1066_v15  ;;  %v1060_v20 = vpop.f32.mrb[3].mxu0  ;;  %v1077_v29 = vmul.f32 0.25, %v1066_v15 }
 0x347   : > { %v1061_v21 = vadd.f32 %v2068_v13, %v1060_v20  ;;  %v1075_v22 = vmul.f32 0.25, %v1058_v17 }
 0x348   : > { %1086 = vrot.lane.b32.xlu1 %v2802_v19, %s2472_s0  ;;  %v1079_v30 = vpack.c.bf16 %v1077_v29, %v1077_v29 }
 0x349   : > { %v1076_v23 = vmul.f32 0.25, %v1061_v21  ;;  %v2805_v24 = vpack.c.bf16 %v1061_v21, %v1058_v17 }
 0x34b   : > { %1084 = vrot.lane.b32.xlu0 %v2805_v24, %s2472_s0  ;;  %v1078_v28 = vpack.c.bf16 %v1076_v23, %v1075_v22 }
 0x34c   : > { %1260 = vrot.lane.b32.xlu1 %v2805_v24, %s2473_s30 }
 0x34d   : > { %2169 = vmatprep.mubr.msk.bf16.mxu1 %vm1088_vm6, %v1078_v28 }
 0x34f   : > { %1256 = vrot.lane.b32.xlu0 %v1078_v28, %s2474_s1 }
 0x350   : > { %1262 = vrot.lane.b32.xlu1 %v2802_v19, %s2473_s30  ;;  %s3096_s30 = scalar_lea.vmem %s3026_s14, %s2665_s2  ;;  %s3097_s2 = sld [smem:[#allocation8_spill]] }
 0x354   : > { %1258 = vrot.lane.b32.xlu1 %v1079_v30, %s2474_s1 }
 0x356   : > { %p2090_p1 = scmp.ne.s32.totalorder %s3097_s2, 1 }
 0x357   : > { %vm2479_vm10 = vmmov (!%p2090_p1), 0   ;;  %s3101_s2 = sld [smem:[#allocation29_spill]] (!%p2090_p1)  ;;  %vm1847_vm11 = vcmask (!%p2090_p1), 73728  }
 0x3ba   : > { %v1087_v33 = vpop.permute.xlu1 %1086 }
 0x3bb   : > { %v1099_v34 = vsel %vm1088_vm6, %v1087_v33, 0 }
 0x3bd   : > { %v1085_v31 = vpop.permute.xlu0 %1084 }
 0x3be   : > { %2245 = vmatprep.subr.msk.bf16.mxu1 %vm1088_vm6, %v1085_v31  ;;  %v1096_v32 = vsel %vm1088_vm6, %v1085_v31, 0  ;;  %v1261_v35 = vpop.permute.xlu1 %1260 }
 0x3bf   : > { %2166 = vmatpush3.bf16.xpose.msra.mxu1 %v1096_v32  ;;  %v1271_v36 = vsel %vm1088_vm6, %v1261_v35, 0 }
 0x3c0   : > { %2246 = vmatprep.subr.msk.bf16.mxu1 %vm1088_vm6, %v1087_v33 }
 0x3c1   : > { %v1257_v37 = vpop.permute.xlu0 %1256 }
 0x3c2   : > { %v1263_v38 = vpop.permute.xlu1 %1262 }
 0x3c3   : > { %v1274_v39 = vsel %vm1088_vm6, %v1263_v38, 0 }
 0x3c6   : > { %v1259_v40 = vpop.permute.xlu1 %1258 }
 0x3c7   : > { %2168 = vmatpush3.bf16.xpose.msra.mxu1 %v1099_v34 }
 0x3c8   : > { %2247 = vmatprep.subr.msk.bf16.mxu1 %vm1088_vm6, %v1261_v35 }
 0x3ce   : > { %2170 = vmatmul.mubr.msk.bf16.vlgmr.msra.gmra.mrb[0].mxu1 %vm1088_vm6, %v1079_v30 }
 0x3cf   : > { %2182 = vmatpush3.bf16.xpose.msra.mxu1 %v1271_v36  ;;  %2185 = vmatprep.mubr.msk.bf16.mxu1 %vm1088_vm6, %v1257_v37 }
 0x3d0   : > { %2248 = vmatprep.subr.msk.bf16.mxu1 %vm1088_vm6, %v1263_v38 }
 0x3d7   : > { %2184 = vmatpush3.bf16.xpose.msra.mxu1 %v1274_v39 }
 0x3de   : > { %2186 = vmatmul.mubr.msk.bf16.vlgmr.msra.gmra.mrb[4].mxu1 %vm1088_vm6, %v1259_v40 }
 0x4a1   : > { %v2171_v41 = vpop.f32.mrb[0].mxu1 }
 0x4a2   : > { %v1135_v42 = vpop.f32.mrb[1].mxu1  ;;  %v1157_v54 = vsel %vm1156_vm8, %v2171_v41, -inf }
 0x4a3   : > { %v2172_v43 = vpop.f32.mrb[2].mxu1  ;;  %v1150_v44 = vsel %vm1149_vm7, %v1135_v42, -inf }
 0x4a4   : > { %1151 = vmax.xlane.f32.xlu0 %v1150_v44  ;;  %v1138_v45 = vpop.f32.mrb[3].mxu1 }
 0x4a5   : > { %v1153_v46 = vsel %vm1149_vm7, %v1138_v45, -inf }
 0x4a6   : > { %1154 = vmax.xlane.f32.xlu1 %v1153_v46 }
 0x4b1   : > { %v2187_v47 = vpop.f32.mrb[4].mxu1 }
 0x4b2   : > { %v1310_v48 = vpop.f32.mrb[5].mxu1  ;;  %v1330_v49 = vsel %vm1156_vm8, %v2187_v47, -inf }
 0x4b3   : > { %v2188_v50 = vpop.f32.mrb[6].mxu1  ;;  %1331 = vmax.xlane.f32.xlu1 %v1330_v49  ;;  %v1324_v51 = vsel %vm1149_vm7, %v1310_v48, -inf }
 0x4b4   : > { %1325 = vmax.xlane.f32.xlu0 %v1324_v51  ;;  %v1313_v52 = vpop.f32.mrb[7].mxu1 }
 0x4b5   : > { %v1327_v53 = vsel %vm1149_vm7, %v1313_v52, -inf }
 0x4b8   : > { %1328 = vmax.xlane.f32.xlu0 %v1327_v53 }
 0x4bc   : > { %1158 = vmax.xlane.f32.xlu0 %v1157_v54  ;;  %v1071_v54 = vld [vmem:[%s2693_s4] sm:$0xff] }
 0x531   : > { %v1152_v58 = vpop.xlane.xlu0 %1151 }
 0x532   : > { %v1160_v2 = vsub.f32 %v1135_v42, %v1152_v58  ;;  %v1074_v58 = vld [vmem:[%s2693_s4 + $0x18] sm:$0xff] }
 0x533   : > { %v1155_v55 = vpop.xlane.xlu1 %1154 }
 0x534   : > { %v1161_v56 = vsub.f32 %v1138_v45, %v1155_v55  ;;  %v1163_v5 = vmul.f32 1.442695, %v1160_v2  ;;  %v1072_v55 = vld [vmem:[%s2693_s4 + $0x8] sm:$0xff] }
 0x536   : > { %v1165_v57 = vmul.f32 1.442695, %v1161_v56  ;;  %v1253_v56 = vpack.c.bf16 %v1072_v55, %v1071_v54  ;;  %v1691_v54 = vld [vmem:[%s2724_s3 + $0x18] sm:$0xff] }
 0x538   : > { %2336 = vpow2.f32 %v1165_v57  ;;  %v1073_v57 = vld [vmem:[%s2693_s4 + $0x10] sm:$0xff] }
 0x540   : > { %v1332_v59 = vpop.xlane.xlu1 %1331 }
 0x541   : > { %v1335_v60 = vsub.f32 %v2187_v47, %v1332_v59  ;;  %v1326_v61 = vpop.xlane.xlu0 %1325  ;;  %v1423_v59 = vpack.c.bf16 %v1074_v58, %v1073_v57 }
 0x542   : > { %v2828_v62 = vpop.eup %2336  ;;  %v1333_v6 = vsub.f32 %v1310_v48, %v1326_v61 }
 0x543   : > { %v1340_v63 = vmul.f32 1.442695, %v1335_v60  ;;  %v1172_v0 = vsel %vm1149_vm7, %v2828_v62, 0.0 }
 0x544   : > { %1173 = vadd.xlane.f32.xlu1 %v1172_v0  ;;  %v1336_v9 = vmul.f32 1.442695, %v1333_v6 }
 0x545   : > { %2338 = vpow2.f32 %v1340_v63  ;;  %v1329_v1 = vpop.xlane.xlu0 %1328 }
 0x546   : > { %v1334_v17 = vsub.f32 %v1313_v52, %v1329_v1 }
 0x548   : > { %v1338_v18 = vmul.f32 1.442695, %v1334_v17  ;;  %v2083_v17 = vld [vmem:[%s3093_s20] ss:$0 sm:$0xff] }
 0x549   : > { %v1159_v3 = vpop.xlane.xlu0 %1158 }
 0x54a   : > { %v1162_v4 = vsub.f32 %v2171_v41, %v1159_v3 }
 0x54c   : > { %v1167_v7 = vmul.f32 1.442695, %v1162_v4 }
 0x54e   : > { %2340 = vpow2.f32 %v1167_v7 }
 0x54f   : > { %v2832_v8 = vpop.eup %2338  ;;  %2342 = vpow2.f32 %v1163_v5 }
 0x550   : > { %v1348_v10 = vsel %vm1156_vm8, %v2832_v8, 0.0  ;;  %2344 = vpow2.f32 %v1336_v9 }
 0x551   : > { %1349 = vadd.xlane.f32.xlu1 %v1348_v10  ;;  %2346 = vpow2.f32 %v1338_v18 }
 0x558   : > { %v2341_v11 = vpop.eup %2340 }
 0x559   : > { %v1175_v12 = vsel %vm1156_vm8, %v2341_v11, 0.0  ;;  %v2343_v13 = vpop.eup %2342 }
 0x55a   : > { %1176 = vadd.xlane.f32.xlu0 %v1175_v12  ;;  %v1169_v14 = vsel %vm1149_vm7, %v2343_v13, 0.0  ;;  %v2345_v15 = vpop.eup %2344 }
 0x55b   : > { %v1342_v16 = vsel %vm1149_vm7, %v2345_v15, 0.0  ;;  %v2347_v20 = vpop.eup %2346 }
 0x55c   : > { %v1345_v21 = vsel %vm1149_vm7, %v2347_v20, 0.0 }
 0x55e   : > { %1170 = vadd.xlane.f32.xlu0 %v1169_v14 }
 0x562   : > { %1343 = vadd.xlane.f32.xlu0 %v1342_v16  ;;  %1359 = vrot.lane.b32.xlu1 %v2805_v24, %s2475_s19 }
 0x566   : > { %1188 = vrot.lane.b32.xlu1 %v2802_v19, %s2476_s17 }
 0x578   : > { %1186 = vrot.lane.b32.xlu0 %v2805_v24, %s2476_s17  ;;  %v2477_v24 = vmov 0   ;;  %s3098_s17 = sld [smem:[#allocation28_spill]] (!%p2090_p1) }
 0x579   : > { %v1199_v32 = vsel %vm1197_vm9, 65535, %v2477_v24 }
 0x58a   : > { %1346 = vadd.xlane.f32.xlu1 %v1345_v21 }
 0x59b   : > { %1361 = vrot.lane.b32.xlu1 %v2802_v19, %s2475_s19 }
 0x5d1   : > { %v1174_v22 = vpop.xlane.xlu1 %1173 }
 0x5de   : > { %v1350_v23 = vpop.xlane.xlu1 %1349 }
 0x5e2   : > { %v1360_v28 = vpop.permute.xlu1 %1359 }
 0x5e3   : > { %2189 = vmatprep.subr.bf16.mxu1 %v1360_v28 }
 0x5e4   : > { %2190 = vmatpush3.bf16.msra.mxu1 %v1360_v28 }
 0x5e6   : > { %v1189_v33 = vpop.permute.xlu1 %1188 }
 0x5e7   : > { %v1177_v29 = vpop.xlane.xlu0 %1176  ;;  %v1201_v37 = vand.u32 %v1199_v32, %v1189_v33 }
 0x5e8   : > { %2348 = vrcp.f32 %v1177_v29 }
 0x5e9   : > { %2350 = vrcp.f32 %v1174_v22 }
 0x5eb   : > { %v1171_v30 = vpop.xlane.xlu0 %1170 }
 0x5ec   : > { %2352 = vrcp.f32 %v1171_v30 }
 0x5ed   : > { %2354 = vrcp.f32 %v1350_v23 }
 0x5ef   : > { %v1344_v31 = vpop.xlane.xlu0 %1343 }
 0x5f0   : > { %2356 = vrcp.f32 %v1344_v31 }
 0x5f2   : > { %v2349_v34 = vpop.eup %2348 }
 0x5f3   : > { %v1187_v35 = vpop.permute.xlu0 %1186  ;;  %v2351_v36 = vpop.eup %2350  ;;  %v1183_v38 = vmul.f32 %v2349_v34, %v2341_v11 }
 0x5f4   : > { %2173 = vmatprep.subr.bf16.mxu0 %v1187_v35  ;;  %v1182_v40 = vmul.f32 %v2351_v36, %v2828_v62 }
 0x5f5   : > { %2174 = vmatpush3.bf16.msra.mxu0 %v1187_v35  ;;  %v1185_v42 = vpack.c.bf16 %v1183_v38, %v1183_v38 }
 0x5f6   : > { %v2353_v19 = vpop.eup %2352  ;;  %2175 = vmatprep.subr.bf16.mxu0 %v1201_v37 }
 0x5f7   : > { %v1181_v39 = vmul.f32 %v2353_v19, %v2343_v13  ;;  %v2355_v46 = vpop.eup %2354 }
 0x5f8   : > { %v1356_v49 = vmul.f32 %v2355_v46, %v2832_v8 }
 0x5f9   : > { %2176 = vmatpush3.bf16.msra.mxu0 %v1201_v37  ;;  %v1184_v41 = vpack.c.bf16 %v1182_v40, %v1181_v39 }
 0x5fa   : > { %v2357_v47 = vpop.eup %2356  ;;  %v1358_v53 = vpack.c.bf16 %v1356_v49, %v1356_v49  ;;  %2203 = vmatprep.subr.bf16.mxu0 %v1253_v56 }
 0x5fb   : > { %2177 = vmatprep.mubr.msk.bf16.mxu0 %vm1149_vm7, %v1184_v41  ;;  %v1354_v50 = vmul.f32 %v2357_v47, %v2345_v15  ;;  %v1606_v47 = vld [vmem:[%s2710_s28 + $0x10] sm:$0xff] }
 0x5fc   : > { %2178 = vmatmul.mubr.msk.bf16.vlgmr.msra.gmra.mrb[4].mxu0 %vm1149_vm7, %v1185_v42 }
 0x5fd   : > { %2204 = vmatpush3.bf16.msra.mxu0 %v1253_v56 }
 0x617   : > { %v1347_v43 = vpop.xlane.xlu1 %1346 }
 0x618   : > { %2358 = vrcp.f32 %v1347_v43 }
 0x61b   : > { %v1362_v44 = vpop.permute.xlu1 %1361 }
 0x61c   : > { %v1371_v45 = vand.u32 %v1362_v44, %v1199_v32  ;;  %v1604_v44 = vld [vmem:[%s2710_s28] sm:$0xff] }
 0x61e   : > { %2191 = vmatprep.subr.bf16.mxu1 %v1371_v45 }
 0x61f   : > { %2192 = vmatpush3.bf16.msra.mxu1 %v1371_v45  ;;  %v1605_v45 = vld [vmem:[%s2710_s28 + $0x8] sm:$0xff] }
 0x620   : > { %2197 = vmatprep.subr.bf16.mxu1 %v1423_v59  ;;  %v1610_v46 = vpack.c.bf16 %v1605_v45, %v1604_v44 }
 0x622   : > { %v2359_v48 = vpop.eup %2358 }
 0x623   : > { %v1355_v51 = vmul.f32 %v2359_v48, %v2347_v20  ;;  %v1607_v48 = vld [vmem:[%s2710_s28 + $0x18] sm:$0xff] }
 0x624   : > { %v1611_v49 = vpack.c.bf16 %v1607_v48, %v1606_v47 }
 0x625   : > { %v1357_v52 = vpack.c.bf16 %v1355_v51, %v1354_v50  ;;  %v1688_v50 = vld [vmem:[%s2724_s3] sm:$0xff]  ;;  %v1689_v51 = vld [vmem:[%s2724_s3 + $0x8] sm:$0xff] }
 0x627   : > { %2193 = vmatprep.mubr.msk.bf16.mxu1 %vm1149_vm7, %v1357_v52  ;;  %v1690_v52 = vld [vmem:[%s2724_s3 + $0x10] sm:$0xff] }
 0x628   : > { %2194 = vmatmul.mubr.msk.bf16.vlgmr.msra.gmra.mrb[8].mxu1 %vm1149_vm7, %v1358_v53  ;;  %v1706_v53 = vpack.c.bf16 %v1689_v51, %v1688_v50  ;;  %v1707_v55 = vpack.c.bf16 %v1691_v54, %v1690_v52 }
 0x629   : > { %2198 = vmatpush3.bf16.msra.mxu1 %v1423_v59 }
 0x62a   : > { %2209 = vmatprep.subr.bf16.mxu1 %v1610_v46  ;;  %2217 = vmatprep.subr.bf16.mxu0 %v1706_v53 }
 0x6cf   : > { %v2179_v60 = vpop.f32.mrb[4].mxu0 }
 0x6d0   : > { %v1237_v61 = vpop.f32.mrb[5].mxu0  ;;  %v1252_v1 = vpack.c.bf16 %v2179_v60, %v2179_v60 }
 0x6d1   : > { %v2180_v62 = vpop.f32.mrb[6].mxu0 }
 0x6d2   : > { %v1240_v63 = vpop.f32.mrb[7].mxu0 }
 0x6d3   : > { %v1251_v0 = vpack.c.bf16 %v1240_v63, %v1237_v61 }
 0x6d5   : > { %2205 = vmatprep.mubr.msk.bf16.mxu0 %vm1088_vm6, %v1251_v0 }
 0x6d6   : > { %2206 = vmatmul.mubr.msk.bf16.vlgmr.msra.gmra.mrb[8].mxu0 %vm1088_vm6, %v1252_v1 }
 0x6d7   : > { %2218 = vmatpush3.bf16.msra.mxu0 %v1706_v53 }
 0x6d8   : > { %2219 = vmatprep.subr.bf16.mxu0 %v1707_v55 }
 0x6db   : > { %2220 = vmatpush3.bf16.msra.mxu0 %v1707_v55 }
 0x6fb   : > { %v2195_v2 = vpop.f32.mrb[8].mxu1 }
 0x6fc   : > { %v1407_v3 = vpop.f32.mrb[9].mxu1  ;;  %v1422_v7 = vpack.c.bf16 %v2195_v2, %v2195_v2 }
 0x6fd   : > { %v2196_v4 = vpop.f32.mrb[10].mxu1 }
 0x6fe   : > { %v1410_v5 = vpop.f32.mrb[11].mxu1 }
 0x6ff   : > { %v1421_v6 = vpack.c.bf16 %v1410_v5, %v1407_v3  ;;  %v2084_v3 = vld [vmem:[%s3094_s29] ss:$0 sm:$0xff] }
 0x701   : > { %2199 = vmatprep.mubr.msk.bf16.mxu1 %vm1088_vm6, %v1421_v6 }
 0x702   : > { %2200 = vmatmul.mubr.msk.bf16.vlgmr.msra.gmra.mrb[12].mxu1 %vm1088_vm6, %v1422_v7 }
 0x703   : > { %2210 = vmatpush3.bf16.msra.mxu1 %v1610_v46 }
 0x704   : > { %2211 = vmatprep.subr.bf16.mxu1 %v1611_v49 }
 0x707   : > { %2212 = vmatpush3.bf16.msra.mxu1 %v1611_v49 }
 0x7a9   : > { %v2207_v8 = vpop.f32.mrb[8].mxu0 }
 0x7aa   : > { %v1518_v9 = vpop.f32.mrb[9].mxu0 }
 0x7ab   : > { %v2208_v10 = vpop.f32.mrb[10].mxu0 }
 0x7ac   : > { %v1521_v11 = vpop.f32.mrb[11].mxu0 }
 0x7d5   : > { %v2201_v12 = vpop.f32.mrb[12].mxu1 }
 0x7d6   : > { %v1527_v13 = vadd.f32 %v2207_v8, %v2201_v12  ;;  %v1464_v14 = vpop.f32.mrb[13].mxu1 }
 0x7d7   : > { %v1519_v15 = vadd.f32 %v1518_v9, %v1464_v14  ;;  %v2202_v16 = vpop.f32.mrb[14].mxu1  ;;  %v2085_v9 = vld [vmem:[%s3095_s9] ss:$0 sm:$0xff]  ;;  %s3099_s9 = sld [smem:[#allocation26_spill]] (!%p2090_p1) }
 0x7d8   : > { %v1467_v18 = vpop.f32.mrb[15].mxu1  ;;  %v1534_v20 = vadd.f32 %v1527_v13, %v2765_v26 }
 0x7d9   : > { %v1532_v21 = vadd.f32 %v1519_v15, %v2763_v25  ;;  %v1522_v22 = vadd.f32 %v1521_v11, %v1467_v18  ;;  %v1693_v18 = vld [vmem:[%s2724_s3 + $0x28] sm:$0xff] }
 0x7da   : > { %v2868_v29 = vadd.f32 %v2083_v17, %v1534_v20 }
 0x7db   : > { %v2865_v23 = vadd.f32 %v2083_v17, %v1532_v21  ;;  %v1533_v28 = vadd.f32 %v1522_v22, %v2767_v27  ;;  %v1694_v21 = vld [vmem:[%s2724_s3 + $0x30] sm:$0xff]  ;;  %v1695_v22 = vld [vmem:[%s2724_s3 + $0x38] sm:$0xff] }
 0x7dc   : > { %v1553_v25 = vsel %vm949_vm5, %v2868_v29, 0.0 }
 0x7dd   : > { %v2870_v30 = vadd.f32 %v2083_v17, %v1533_v28  ;;  %v1547_v31 = vsel %vm942_vm4, %v2865_v23, 0.0  ;;  %v1692_v17 = vld [vmem:[%s2724_s3 + $0x20] sm:$0xff]  ;;  %v1709_v28 = vpack.c.bf16 %v1695_v22, %v1694_v21 }
 0x7de   : > { %1548 = vadd.xlane.f32.xlu0 %v1547_v31  ;;  %v1708_v20 = vpack.c.bf16 %v1693_v18, %v1692_v17  ;;  %v1696_v31 = vld [vmem:[%s2724_s3 + $0x40] sm:$0xff]  ;;  %v1799_v18 = vld [vmem:[%s3098_s17 + $0x18] sm:$0xff] (!%p2090_p1) }
 0x7df   : > { %v1550_v24 = vsel %vm942_vm4, %v2870_v30, 0.0 }
 0x7e0   : > { %1551 = vadd.xlane.f32.xlu1 %v1550_v24  ;;  %2221 = vmatprep.subr.bf16.mxu0 %v1708_v20  ;;  %v1697_v24 = vld [vmem:[%s2724_s3 + $0x48] sm:$0xff] }
 0x7e1   : > { %2222 = vmatpush3.bf16.msra.mxu0 %v1708_v20 }
 0x7e2   : > { %1554 = vadd.xlane.f32.xlu0 %v1553_v25  ;;  %2223 = vmatprep.subr.bf16.mxu0 %v1709_v28  ;;  %v1710_v25 = vpack.c.bf16 %v1697_v24, %v1696_v31  ;;  %v1779_v24 = vld [vmem:[%s3099_s9] sm:$0x1] (!%p2090_p1) }
 0x7e5   : > { %2224 = vmatpush3.bf16.msra.mxu0 %v1709_v28 }
 0x7e6   : > { %2225 = vmatprep.subr.bf16.mxu0 %v1710_v25 }
 0x7e9   : > { %2226 = vmatpush3.bf16.msra.mxu0 %v1710_v25 }
 0x86b   : > { %v1549_v26 = vpop.xlane.xlu0 %1548 }
 0x86c   : > { %v1556_v32 = vmul.f32 0.03125, %v1549_v26  ;;  %v1698_v26 = vld [vmem:[%s2724_s3 + $0x50] sm:$0xff] }
 0x86d   : > { %v1552_v33 = vpop.xlane.xlu1 %1551 }
 0x86e   : > { %v1559_v27 = vsub.f32 %v2865_v23, %v1556_v32  ;;  %v1557_v34 = vmul.f32 0.03125, %v1552_v33  ;;  %v1699_v32 = vld [vmem:[%s2724_s3 + $0x58] sm:$0xff] }
 0x86f   : > { %v1555_v35 = vpop.xlane.xlu0 %1554  ;;  %v1711_v33 = vpack.c.bf16 %v1699_v32, %v1698_v26 }
 0x870   : > { %v1560_v36 = vsub.f32 %v2870_v30, %v1557_v34  ;;  %v1558_v37 = vmul.f32 0.03125, %v1555_v35  ;;  %v1562_v19 = vmul.f32 %v1559_v27, %v1559_v27  ;;  %v1701_v34 = vld [vmem:[%s2724_s3 + $0x68] sm:$0xff] }
 0x871   : > { %2227 = vmatprep.subr.bf16.mxu0 %v1711_v33 }
 0x872   : > { %v1561_v38 = vsub.f32 %v2868_v29, %v1558_v37  ;;  %v1565_v39 = vsel %vm942_vm4, %v1562_v19, 0.0  ;;  %v1563_v40 = vmul.f32 %v1560_v36, %v1560_v36  ;;  %2228 = vmatpush3.bf16.msra.mxu0 %v1711_v33  ;;  %v1703_v37 = vld [vmem:[%s2724_s3 + $0x78] sm:$0xff] }
 0x873   : > { %1566 = vadd.xlane.f32.xlu0 %v1565_v39 }
 0x874   : > { %v1564_v41 = vmul.f32 %v1561_v38, %v1561_v38  ;;  %v1568_v43 = vsel %vm942_vm4, %v1563_v40, 0.0 }
 0x876   : > { %v1571_v42 = vsel %vm949_vm5, %v1564_v41, 0.0 }
 0x877   : > { %1572 = vadd.xlane.f32.xlu1 %v1571_v42  ;;  %1569 = vadd.xlane.f32.xlu0 %v1568_v43 }
 0x900   : > { %v1567_v56 = vpop.xlane.xlu0 %1566 }
 0x901   : > { %v1574_v57 = vmul.f32 0.03125, %v1567_v56 }
 0x903   : > { %v1577_v58 = vadd.f32 1e-06, %v1574_v57 }
 0x904   : > { %v1570_v59 = vpop.xlane.xlu0 %1569  ;;  %v1573_v60 = vpop.xlane.xlu1 %1572 }
 0x905   : > { %2360 = vrsqrt.f32 %v1577_v58  ;;  %v1575_v61 = vmul.f32 0.03125, %v1570_v59  ;;  %v1576_v62 = vmul.f32 0.03125, %v1573_v60 }
 0x907   : > { %v1578_v63 = vadd.f32 1e-06, %v1575_v61  ;;  %v1579_v0 = vadd.f32 1e-06, %v1576_v62 }
 0x909   : > { %2362 = vrsqrt.f32 %v1578_v63  ;;  %v2089_v63 = vld [vmem:[%s857_s21] ss:$0 sm:$0xff] }
 0x90a   : > { %2364 = vrsqrt.f32 %v1579_v0 }
 0x90f   : > { %v2361_v1 = vpop.eup %2360 }
 0x910   : > { %v1583_v2 = vmul.f32 %v2361_v1, %v1559_v27  ;;  %v1700_v27 = vld [vmem:[%s2724_s3 + $0x60] sm:$0xff] }
 0x911   : > { %v1712_v35 = vpack.c.bf16 %v1701_v34, %v1700_v27  ;;  %v1803_v34 = vld [vmem:[%s3101_s2] sm:$0x1] (!%p2090_p1) }
 0x912   : > { %v1592_v7 = vmul.f32 %v2084_v3, %v1583_v2 }
 0x913   : > { %v2363_v4 = vpop.eup %2362  ;;  %2229 = vmatprep.subr.bf16.mxu0 %v1712_v35 }
 0x914   : > { %v2365_v5 = vpop.eup %2364  ;;  %v1584_v6 = vmul.f32 %v2363_v4, %v1560_v36  ;;  %v1601_v12 = vadd.f32 %v2085_v9, %v1592_v7  ;;  %2230 = vmatpush3.bf16.msra.mxu0 %v1712_v35  ;;  %v1702_v36 = vld [vmem:[%s2724_s3 + $0x70] sm:$0xff] }
 0x915   : > { %v1585_v8 = vmul.f32 %v2365_v5, %v1561_v38  ;;  %v1713_v19 = vpack.c.bf16 %v1703_v37, %v1702_v36  ;;  %v2086_v38 = vld [vmem:[%s3096_s30] ss:$0 sm:$0xff]  ;;  %s3100_s30 = sld [smem:[#allocation27_spill]] (!%p2090_p1) }
 0x916   : > { %v1593_v10 = vmul.f32 %v2084_v3, %v1584_v6 }
 0x917   : > { %v1594_v11 = vmul.f32 %v2084_v3, %v1585_v8  ;;  %2231 = vmatprep.subr.bf16.mxu0 %v1713_v19 }
 0x918   : > { %v1602_v13 = vadd.f32 %v2085_v9, %v1593_v10  ;;  %2232 = vmatpush3.bf16.msra.mxu0 %v1713_v19 }
 0x919   : > { %v1603_v14 = vadd.f32 %v2085_v9, %v1594_v11 }
 0x91a   : > { %v1608_v15 = vpack.c.bf16 %v1602_v13, %v1601_v12 }
 0x91b   : > { %v1609_v16 = vpack.c.bf16 %v1603_v14, %v1603_v14  ;;  %v1796_v14 = vld [vmem:[%s3098_s17] sm:$0xff] (!%p2090_p1) }
 0x91c   : > { %2213 = vmatprep.mubr.msk.bf16.mxu1 %vm942_vm4, %v1608_v15  ;;  %v1798_v15 = vld [vmem:[%s3098_s17 + $0x10] sm:$0xff] (!%p2090_p1)  ;;  %v1780_v26 = vld [vmem:[%s3100_s30] sm:$0x1] (!%p2090_p1) }
 0x91d   : > { %2214 = vmatmul.mubr.msk.bf16.vlgmr.msra.gmra.mrb[16].mxu1 %vm942_vm4, %v1609_v16  ;;  %v2478_v16 = vmov (!%p2090_p1), 0.0   ;;  %v1802_v20 = vpack.c.bf16 (!%p2090_p1), %v1799_v18, %v1798_v15 }
 0x91e   : > { %2237 = vmatprep.subr.bf16.mxu0 (!%p2090_p1), %v2478_v16 }
 0x9f0   : > { %v2215_v39 = vpop.f32.mrb[16].mxu1 }
 0x9f1   : > { %v1668_v40 = vadd.f32 %v2215_v39, %v2086_v38  ;;  %v1659_v41 = vpop.f32.mrb[17].mxu1 }
 0x9f2   : > { %v1660_v42 = vadd.f32 %v2086_v38, %v1659_v41  ;;  %v2216_v43 = vpop.f32.mrb[18].mxu1 }
 0x9f3   : > { %v1678_v44 = vmul.f32 0.70710677, %v1668_v40  ;;  %v1662_v45 = vpop.f32.mrb[19].mxu1  ;;  %v1675_v54 = vmul.f32 0.5, %v1668_v40 }
 0x9f4   : > { %v1676_v46 = vmul.f32 0.70710677, %v1660_v42  ;;  %v1663_v47 = vadd.f32 %v2086_v38, %v1662_v45  ;;  %v1673_v55 = vmul.f32 0.5, %v1660_v42 }
 0x9f5   : > { %2366 = verf.f32 %v1678_v44 }
 0x9f6   : > { %2368 = verf.f32 %v1676_v46  ;;  %v1677_v48 = vmul.f32 0.70710677, %v1663_v47  ;;  %v1674_v56 = vmul.f32 0.5, %v1663_v47 }
 0x9f8   : > { %2370 = verf.f32 %v1677_v48 }
 0x9ff   : > { %v2367_v49 = vpop.eup %2366 }
 0xa00   : > { %v2369_v50 = vpop.eup %2368  ;;  %v1684_v51 = vadd.f32 1.0, %v2367_v49 }
 0xa01   : > { %v1682_v52 = vadd.f32 1.0, %v2369_v50 }
 0xa02   : > { %v2371_v53 = vpop.eup %2370  ;;  %v1687_v58 = vmul.f32 %v1684_v51, %v1675_v54 }
 0xa03   : > { %v1683_v57 = vadd.f32 1.0, %v2371_v53  ;;  %v1685_v59 = vmul.f32 %v1682_v52, %v1673_v55 }
 0xa04   : > { %v1705_v62 = vpack.c.bf16 %v1687_v58, %v1687_v58 }
 0xa05   : > { %v1686_v60 = vmul.f32 %v1683_v57, %v1674_v56 }
 0xa07   : > { %v1704_v61 = vpack.c.bf16 %v1686_v60, %v1685_v59 }
 0xa09   : > { %2233 = vmatprep.mubr.bf16.mxu0 %v1704_v61 }
 0xa0a   : > { %2234 = vmatmul.mubr.bf16.vlgmr.msra.gmra.mrb[12].mxu0 %v1705_v62 }
 0xa0b   : > { %2241 = vmatprep.mubr.msk.bf16.mxu0 (!%p2090_p1), %vm2479_vm10, %v2478_v16 }
 0xadd   : > { %v2235_v0 = vpop.f32.mrb[12].mxu0 }
 0xade   : > { %v1764_v1 = vadd.f32 %v2235_v0, %v2089_v63  ;;  %v1755_v2 = vpop.f32.mrb[13].mxu0 }
 0xadf   : > { %v1756_v3 = vadd.f32 %v2089_v63, %v1755_v2  ;;  %v2236_v4 = vpop.f32.mrb[14].mxu0  ;;  %1778 = sbr.rel (%p2090_p1) target bundleno = 3316 (0xcf4), region = 112 }
 0xae0   : > { %v1771_v5 = vadd.f32 %v1764_v1, %v2868_v29  ;;  %v1758_v6 = vpop.f32.mrb[15].mxu0 }
 0xae1   : > { %v1769_v7 = vadd.f32 %v1756_v3, %v2865_v23  ;;  %v1759_v8 = vadd.f32 %v2089_v63, %v1758_v6 }
 0xae2   : > { %1774 = vst.msk [vmem:[#allocation2 + $0x10] sm:$0x1] %vm949_vm5, %v1771_v5  ;;  %v1781_v10 = vsel (!%p2090_p1), %vm949_vm5, %v1771_v5, 0.0 }
 0xae3   : > { %1772 = vst.msk [vmem:[#allocation2] sm:$0xff] %vm942_vm4, %v1769_v7  ;;  %v1770_v9 = vadd.f32 %v1759_v8, %v2870_v30  ;;  %1782 = vadd.xlane.f32.xlu0 (!%p2090_p1), %v1781_v10  ;;  %v1797_v30 = vld [vmem:[%s3098_s17 + $0x8] sm:$0xff] (!%p2090_p1) }
 0xae4   : > { %v1801_v17 = vpack.c.bf16 (!%p2090_p1), %v1797_v30, %v1796_v14 }
 0xae5   : > { %1773 = vst.msk [vmem:[#allocation2 + $0x8] sm:$0xff] %vm942_vm4, %v1770_v9 }
 0xae6   : > { %2238 = vmatpush3.bf16.msra.mxu0 %v1801_v17 }
 0xae7   : > { %2239 = vmatprep.subr.bf16.mxu0 %v2478_v16 }
 0xaea   : > { %2240 = vmatpush3.bf16.msra.mxu0 %v1802_v20 }
 0xb70   : > { %v1783_v11 = vpop.xlane.xlu0 %1782 }
 0xb71   : > { %v1784_v29 = vmul.f32 0.03125, %v1783_v11 }
 0xb73   : > { %v1785_v12 = vsub.f32 %v1771_v5, %v1784_v29 }
 0xb75   : > { %v1786_v13 = vmul.f32 %v1785_v12, %v1785_v12 }
 0xb77   : > { %v1787_v23 = vsel %vm949_vm5, %v1786_v13, 0.0 }
 0xb78   : > { %1788 = vadd.xlane.f32.xlu0 %v1787_v23 }
 0xc05   : > { %v1789_v21 = vpop.xlane.xlu0 %1788 }
 0xc06   : > { %v1790_v22 = vmul.f32 0.03125, %v1789_v21 }
 0xc08   : > { %v1791_v28 = vadd.f32 1e-06, %v1790_v22 }
 0xc0a   : > { %2372 = vrsqrt.f32 %v1791_v28 }
 0xc14   : > { %v2373_v31 = vpop.eup %2372 }
 0xc15   : > { %v1793_v25 = vmul.f32 %v2373_v31, %v1785_v12 }
 0xc17   : > { %v1794_v32 = vmul.f32 %v1793_v25, %v1779_v24 }
 0xc19   : > { %v1795_v33 = vadd.f32 %v1794_v32, %v1780_v26 }
 0xc1b   : > { %v1800_v27 = vpack.c.bf16 %v1795_v33, %v1795_v33 }
 0xc1d   : > { %2242 = vmatmul.mubr.msk.bf16.vlgmr.msra.gmra.mrb[0].mxu0 %vm942_vm4, %v1800_v27 }
 0xcf0   : > { %v1841_v35 = vpop.f32.mrb[0].mxu0 }
 0xcf1   : > { %v1842_v36 = vadd.f32 %v1841_v35, %v1803_v34  ;;  %v2243_v37 = vpop.f32.mrb[1].mxu0 }
 0xcf2   : > { %v1844_v19 = vpop.f32.mrb[2].mxu0 }
 0xcf3   : > { %1848 = vst.msk [vmem:[%s2728_s18] sm:$0x1] %vm1847_vm11, %v1842_v36  ;;  %v2244_v38 = vpop.f32.mrb[3].mxu0 }
 0xcf4 PF: > { %s3102_s21 = sld [smem:[#allocation9_spill]]  ;;  %s3104_s28 = sld [smem:[#allocation30_spill]] }
 0xcf5   : > { %s1862_s29 = sshll.u32 %s2728_s18, 4  ;;  %s3106_s26 = sand.u32 1, %s2444_s25   ;;  %s1863_s29 = int_to_ptr.vmem [resolvable:$true] %s1862_s29 }
 0xcf6   : > { %s1850_s9 = scalar_lea.sflag [#allocation4], %s3106_s26  ;;  %s2374_s23 = scalar_lea.vmem %s1863_s29, 16 }
 0xcf7   : > { %p2375_p2 = scmp.ne.s32.totalorder %s1863_s29, %s2374_s23  ;;  %s2480_s0 = smov [#allocation3]  }
 0xcf8   : > { %s2378_s30 = sshll.u32 %s2480_s0, 4  ;;  %s2379_s30 = int_to_ptr.vmem [resolvable:$false] %s2378_s30 }
 0xcf9   : > { %p2376_p4 = pnand %p2375_p2, %p2640_p3  ;;  %s2380_s3 = scalar_lea.vmem %s2379_s30, 32 }
 0xcfa   : > { %s2092_s4 = sshll.u32 %s3102_s21, 4  ;;  %s3105_s5 = smov %s3104_s28 }
 0xcfb   : > { %s2962_s27 = scalar_lea.hbm %s3104_s28, %s2092_s4  ;;  %p2377_p5 = pneg %p2376_p4 }
 0xcfc   : > { %p2381_p6 = scmp.lt.s32.totalorder %s1863_s29, %s2379_s30  ;;  %p2382_p7 = scmp.lt.s32.totalorder %s2380_s3, %s2374_s23 }
 0xcfe   : > { %p2383_p8 = por %p2382_p7, %p2381_p6 }
 0xd00   : > { %p2384_p10 = pnand %p2383_p8, %p2377_p5 }
 0xd02   : > { %2387 = shalt.err (!%p2384_p10)
}
 0xd03   : > { %s2388_s18 = scalar_lea.hbm %s2962_s27, 16  ;;  %s2392_s21 = scalar_lea.hbm %s3105_s5, 32 }
 0xd04   : > { %p2389_p11 = scmp.ne.s32.totalorder %s2962_s27, %s2388_s18  ;;  %p2393_p0 = scmp.lt.u32.totalorder %s2962_s27, %s3105_s5 }
 0xd05   : > { %p2394_p1 = scmp.lt.u32.totalorder %s2392_s21, %s2388_s18  ;;  %p2396_p4 = scmp.lt.u32.totalorder %s2388_s18, %s2962_s27 }
 0xd06   : > { %p2390_p12 = pnand %p2389_p11, %p2640_p3 }
 0xd07   : > { %p2395_p2 = por %p2394_p1, %p2393_p0 }
 0xd08   : > { %p2391_p13 = pneg %p2390_p12 }
 0xd09   : > { %p2397_p5 = por %p2396_p4, %p2395_p2 }
 0xd0b   : > { %p2398_p6 = pnand %p2397_p5, %p2391_p13 }
 0xd0d   : > { %2401 = shalt.err (!%p2398_p6)
}
 0xd0e   : > { %2249 = dma.vmem_to_hbm [thread:$0]  (%p2640_p3), %s1863_s29, 16, %s2962_s27, %s1850_s9  }
 0xd0f PF: > { %s3107_s20 = sld [smem:[#allocation12_spill]]  ;;  %s3108_s28 = sld [smem:[#allocation6_spill]] }
 0xd15   : > { %p2255_p7 = scmp.ge.s32.totalorder %s3107_s20, 2  ;;  %s1874_s23 = sand.u32 1, %s3108_s28  }
 0xd16   : > { %s1875_s0 = scalar_lea.sflag [#allocation4], %s1874_s23 }
 0xd17   : > { %p2252_p8 = pnand %p2255_p7, %p2650_p9 }
 0xd19   : > { %2435 = dma.done.wait (!%p2252_p8), %s1875_s0, 16  }
 0xd1a   : > { %2437 = vsyncadd (!%p2252_p8), %s1875_s0, 4294967280  ;;  %s34_s0 = sadd.s32 1, %s3107_s20   ;;  %s3110_s30 = sld [smem:[#allocation7_spill]] }
 0xd1b   : > { %p31_p10 = scmp.ge.s32.totalorder %s34_s0, 6   ;;  %s3111_s26 = sld [smem:[#allocation17_spill]] }
 0xd1c   : > { %s3112_s27 = sld [smem:[#allocation10_spill]]  ;;  %s3113_s3 = sld [smem:[#allocation11_spill]] }
 0xd1d   : > { %s3114_s28 = sld [smem:[#allocation13_spill]]  ;;  %s3115_s29 = sld [smem:[#allocation15_spill]] }
 0xd1e   : > { %s3116_s2 = smov %s2444_s25  ;;  %33 = sbr.rel (!%p31_p10) target bundleno = 19 (0x13), region = 183 }
 0xd20   : > { %s3117_s25 = smov %s3110_s30 }
 0xd25   :  { %1879 = vsyncpa [#allocation4], 1 }
 0xd26   :  { %1881 = vsyncpa [#allocation4 + $0x1], 1 }

</bundles_post_ra>
